<compile_context>
chip_gen: v6e
topology: v6e:2x2x1
jax: 0.10.0
libtpu: 0.0.40
codegen_flags: <defaults>
</compile_context>

<pallas_src>
import functools

import jax
import jax.numpy as jnp
from jax.experimental import pallas as pl
from jax.experimental.pallas import tpu as pltpu


# ---------------------------------------------------------------------------
# Tiling helpers
# ---------------------------------------------------------------------------
def _round_up(x, m):
    return ((x + m - 1) // m) * m


def _padded_nodes(num_nodes):
    """Pad the node count so the (TM, TK) tiles below divide it exactly."""
    if num_nodes <= 2048:
        return _round_up(num_nodes, 256)
    return _round_up(num_nodes, 2048)


def _tiles_for(n_pad):
    """Row/reduction tiles for the A stream (review: TM=1024, TK=2048)."""
    if n_pad <= 2048:
        tm = 1024
        while n_pad % tm:          # n_pad is a multiple of 256 -> terminates
            tm //= 2
        tk = n_pad                 # single reduction step; H read once
    else:
        tm, tk = 1024, 2048
    return tm, tk


# Keep the whole (N_pad, D_pad) bf16 H table VMEM-resident up to this size.
_RESIDENT_H_BYTES = 12 * 1024 * 1024


# ---------------------------------------------------------------------------
# Pallas kernel: one fused layer  out = prev + A @ H ;  h_next = bf16(A @ H)
# ---------------------------------------------------------------------------
def _lightgcn_layer_kernel(adj_ref, h_ref, prev_ref, h_next_ref, out_ref):
    """Grid = (row tiles i [parallel], reduction tiles k [arbitrary]).

    out_ref (f32, block index depends only on i) is the resident accumulator:
    seeded from prev_ref at k == 0, MXU-accumulated across k; the bf16
    next-layer H is recovered at the last k by subtracting prev (exact in f32
    up to rounding of the final sum).
    """
    k = pl.program_id(1)
    tk = adj_ref.shape[1]

    @pl.when(k == 0)
    def _():
        out_ref[...] = prev_ref[...]

    if h_ref.shape[0] == tk:
        # Streamed H (or single reduction step): the block IS the k-chunk.
        h_blk = h_ref[...]
    else:
        # VMEM-resident H: slice the k-chunk out of the resident table.
        start = pl.multiple_of(k * tk, tk)
        h_blk = h_ref[pl.ds(start, tk), :]

    # bf16 x bf16 on the MXU, f32 accumulation directly into the output block.
    out_ref[...] += jnp.dot(adj_ref[...], h_blk,
                            preferred_element_type=jnp.float32)

    @pl.when(k == pl.num_programs(1) - 1)
    def _():
        h_next_ref[...] = (out_ref[...] - prev_ref[...]).astype(
            h_next_ref.dtype)


def _propagate_layer(adj_bf16, h_bf16, out_prev_f32):
    """One fused propagation layer. Returns (h_next_bf16, out_f32)."""
    n_pad, d_pad = h_bf16.shape
    tm, tk = _tiles_for(n_pad)
    grid = (n_pad // tm, n_pad // tk)

    resident_h = n_pad * d_pad * 2 <= _RESIDENT_H_BYTES
    if resident_h:
        # Read H from HBM once per layer; the kernel slices the k-chunk.
        # TODO(synk): pipeline_mode=pl.Buffered(1) would drop the second
        # (never-refetched) buffer of the resident table.
        h_spec = pl.BlockSpec((n_pad, d_pad), lambda i, k: (0, 0))
        h_buf_rows = n_pad
    else:
        h_spec = pl.BlockSpec((tk, d_pad), lambda i, k: (k, 0))
        h_buf_rows = tk

    # Size the scoped-VMEM request from the real working set (incl. double
    # buffers) instead of a blanket 48 MiB; only ask when the default would
    # not comfortably fit.
    vmem_need = (2 * tm * tk * 2                 # A tiles (bf16)
                 + 2 * h_buf_rows * d_pad * 2    # H buffers (bf16)
                 + 2 * tm * d_pad * 4            # prev-sum input (f32)
                 + 2 * tm * d_pad * 2            # h_next output (bf16)
                 + 2 * tm * d_pad * 4)           # out output (f32)
    params = dict(dimension_semantics=("parallel", "arbitrary"))
    if vmem_need > 12 * 1024 * 1024:
        params["vmem_limit_bytes"] = min(vmem_need + (4 << 20), 40 << 20)

    return pl.pallas_call(
        _lightgcn_layer_kernel,
        out_shape=(
            jax.ShapeDtypeStruct((n_pad, d_pad), jnp.bfloat16),   # H_{l+1}
            jax.ShapeDtypeStruct((n_pad, d_pad), jnp.float32),    # running sum
        ),
        grid_spec=pltpu.PrefetchScalarGridSpec(
            num_scalar_prefetch=0,
            grid=grid,
            in_specs=[
                # A tile: the dominant HBM stream (double-buffered by default).
                # TODO(synk): pl.Buffered(3) here if the profile shows exposed
                # A-tile DMA at step boundaries.
                pl.BlockSpec((tm, tk), lambda i, k: (i, k)),
                h_spec,
                pl.BlockSpec((tm, d_pad), lambda i, k: (i, 0)),   # prev sum
            ],
            out_specs=[
                pl.BlockSpec((tm, d_pad), lambda i, k: (i, 0)),   # h_next
                pl.BlockSpec((tm, d_pad), lambda i, k: (i, 0)),   # out
            ],
        ),
        # Fuse the running sum: reuse the previous sum's HBM buffer for the
        # new sum (inputs: adj=0, h=1, prev=2 -> output index 1).
        input_output_aliases={2: 1},
        compiler_params=pltpu.CompilerParams(**params),
    )(adj_bf16, h_bf16, out_prev_f32)


# ---------------------------------------------------------------------------
# Forward pass: layer loop outside the kernel, unscaled f32 running sum
# ---------------------------------------------------------------------------
@functools.partial(jax.jit, static_argnames=("num_layers",))
def lightgcn_forward_pallas(adj_bf16, x0, num_layers):
    n, d = x0.shape
    n_pad = adj_bf16.shape[0]
    d_pad = _round_up(d, 128)    # lane-dense last dim (review: pad 64 -> 128)
    x0_pad = jnp.zeros((n_pad, d_pad), jnp.float32).at[:n, :d].set(
        x0.astype(jnp.float32))
    h = x0_pad.astype(jnp.bfloat16)
    out = x0_pad                 # unscaled running sum (f32)
    for _ in range(num_layers):
        h, out = _propagate_layer(adj_bf16, h, out)
    out = out * (1.0 / (num_layers + 1))   # single final scale
    return out[:n, :d]


# ---------------------------------------------------------------------------
# Graph preprocessing glue (cheap, pure JAX)
# ---------------------------------------------------------------------------
def build_normalized_adjacency(edge_index, num_nodes, padded_nodes,
                               edge_weight=None):
    """deg -> deg^-1/2 -> per-edge norm -> dense scatter -> bf16, then pad.

    Degree is the unweighted occurrence count of `row`, matching the PyTorch
    module (torch_geometric.degree ignores edge_weight).
    """
    row, col = edge_index[0], edge_index[1]
    deg = jnp.zeros((num_nodes,), jnp.float32).at[row].add(1.0)
    dinv = jnp.where(deg > 0, jax.lax.rsqrt(jnp.maximum(deg, 1.0)), 0.0)
    norm = dinv[row] * dinv[col]
    if edge_weight is not None:
        norm = norm * edge_weight.astype(jnp.float32)
    # H_next[c] = sum_{e: col[e]==c} norm[e] * H_l[row[e]]  =>  A[c, r] += norm
    adj = jnp.zeros((num_nodes, num_nodes), jnp.float32).at[col, row].add(norm)
    adj = adj.astype(jnp.bfloat16)            # cast before padding (peak HBM)
    pad = padded_nodes - num_nodes
    if pad:
        adj = jnp.pad(adj, ((0, pad), (0, pad)))
    return adj


class LightGCNPallas:
    def __init__(self, num_users, num_items, embed_dim=64, num_layers=3,
                 key=jax.random.PRNGKey(0)):
        self.num_users = num_users
        self.num_items = num_items
        self.num_nodes = num_users + num_items
        self.embed_dim = embed_dim
        self.num_layers = num_layers
        # xavier_uniform_ on the embedding table (N, D), deterministic.
        bound = (6.0 / (self.num_nodes + embed_dim)) ** 0.5
        self.embeddings = jax.random.uniform(
            key, (self.num_nodes, embed_dim), dtype=jnp.float32,
            minval=-bound, maxval=bound)

    def forward(self, edge_index, edge_weight=None):
        n_pad = _padded_nodes(self.num_nodes)
        adj = build_normalized_adjacency(edge_index, self.num_nodes, n_pad,
                                         edge_weight)
        return lightgcn_forward_pallas(adj, self.embeddings, self.num_layers)


# ---------------------------------------------------------------------------
# Pure-JAX f32 reference mirroring the PyTorch loop (sanity check)
# ---------------------------------------------------------------------------
def _reference_forward(model, edge_index, edge_weight=None):
    x0 = model.embeddings
    row, col = edge_index[0], edge_index[1]
    n = x0.shape[0]
    deg = jnp.zeros((n,), jnp.float32).at[row].add(1.0)
    dinv = jnp.where(deg > 0, 1.0 / jnp.sqrt(jnp.maximum(deg, 1.0)), 0.0)
    norm = dinv[row] * dinv[col]
    if edge_weight is not None:
        norm = norm * edge_weight
    h = x0
    out = x0 / (model.num_layers + 1)
    for _ in range(model.num_layers):
        msg = h[row] * norm[:, None]
        h = jnp.zeros_like(x0).at[col].add(msg)
        out = out + h / (model.num_layers + 1)
    return out


if __name__ == "__main__":
    def _run_case(num_users, num_items, num_edges, embed_dim=64, num_layers=3,
                  seed=0):
        num_nodes = num_users + num_items
        key = jax.random.PRNGKey(seed)
        k_emb, k_u, k_i = jax.random.split(key, 3)
        model = LightGCNPallas(num_users, num_items, embed_dim=embed_dim,
                               num_layers=num_layers, key=k_emb)
        # Deterministic bipartite (user <-> item) undirected edges.
        u = jax.random.randint(k_u, (num_edges,), 0, num_users)
        it = jax.random.randint(k_i, (num_edges,), num_users, num_nodes)
        row = jnp.concatenate([u, it])
        col = jnp.concatenate([it, u])
        edge_index = jnp.stack([row, col], axis=0).astype(jnp.int32)

        out = jax.block_until_ready(model.forward(edge_index))
        ref = _reference_forward(model, edge_index)
        assert out.shape == (num_nodes, embed_dim)
        err = float(jnp.max(jnp.abs(out - ref)))
        # bf16 adjacency / bf16 per-layer H with f32 accumulation.
        assert jnp.allclose(out, ref, atol=3e-2, rtol=3e-2), f"max|err|={err}"

    # Small case: single reduction step, H trivially resident.
    _run_case(num_users=12, num_items=20, num_edges=96)
    # Medium case: exercises the tiled reduction (grid k > 1), the
    # VMEM-resident H slice path, multiple row tiles, and the aliased
    # running-sum output.
    _run_case(num_users=1200, num_items=1400, num_edges=6000)

    print("KERNEL_OK")
</pallas_src>

<mosaic_0001>
module attributes {stable_mosaic.version = 11 : i64} {
  func.func @_lightgcn_layer_kernel(%arg0: i32, %arg1: i32, %arg2: memref<256x256xbf16, #tpu.memory_space<vmem>>, %arg3: memref<256x128xbf16, #tpu.memory_space<vmem>>, %arg4: memref<256x128xf32, #tpu.memory_space<vmem>>, %arg5: memref<256x128xbf16, #tpu.memory_space<vmem>>, %arg6: memref<256x128xf32, #tpu.memory_space<vmem>>) attributes {dimension_semantics = [#tpu.dimension_semantics<parallel>, #tpu.dimension_semantics<arbitrary>], iteration_bounds = array<i64: 1, 1>, scalar_prefetch = 0 : i64, scratch_operands = 0 : i64, tpu.core_type = #tpu.core_type<tc>, window_params = [{transform_indices = @transform_0, window_bounds = array<i64: 256, 256>}, {pipeline_mode = #tpu.pipeline_mode<synchronous>, transform_indices = @transform_1, window_bounds = array<i64: 256, 128>}, {transform_indices = @transform_2, window_bounds = array<i64: 256, 128>}, {transform_indices = @transform_3, window_bounds = array<i64: 256, 128>}, {transform_indices = @transform_4, window_bounds = array<i64: 256, 128>}]} {
    %c0_i32 = arith.constant 0 : i32
    %0 = arith.cmpi eq, %arg1, %c0_i32 : i32
    %1 = arith.extui %0 : i1 to i32
    %c0_i32_0 = arith.constant 0 : i32
    %2 = arith.cmpi ne, %1, %c0_i32_0 : i32
    scf.if %2 {
      %c0_10 = arith.constant 0 : index
      %c0_11 = arith.constant 0 : index
      %12 = vector.load %arg4[%c0_10, %c0_11] : memref<256x128xf32, #tpu.memory_space<vmem>>, vector<256x128xf32>
      %c0_12 = arith.constant 0 : index
      %c0_13 = arith.constant 0 : index
      %13 = vector.load %arg6[%c0_12, %c0_13] : memref<256x128xf32, #tpu.memory_space<vmem>>, vector<256x128xf32>
      tpu.vector_store %arg6[%c0_12, %c0_13], %12 {strides = array<i32>} : memref<256x128xf32, #tpu.memory_space<vmem>>, vector<256x128xf32>,
    } else {
    }
    %c0 = arith.constant 0 : index
    %c0_1 = arith.constant 0 : index
    %3 = vector.load %arg3[%c0, %c0_1] : memref<256x128xbf16, #tpu.memory_space<vmem>>, vector<256x128xbf16>
    %c0_2 = arith.constant 0 : index
    %c0_3 = arith.constant 0 : index
    %4 = vector.load %arg6[%c0_2, %c0_3] : memref<256x128xf32, #tpu.memory_space<vmem>>, vector<256x128xf32>
    %c0_4 = arith.constant 0 : index
    %c0_5 = arith.constant 0 : index
    %5 = vector.load %arg2[%c0_4, %c0_5] : memref<256x256xbf16, #tpu.memory_space<vmem>>, vector<256x256xbf16>
    %cst = arith.constant dense<0.000000e+00> : vector<256x128xf32>
    %6 = tpu.matmul %5, %3, %cst {dimension_numbers = #tpu.dot_dimension_numbers<[1], [0], [0], [1], [0, 0, 1, 1], [], []>} : vector<256x256xbf16>, vector<256x128xbf16>, vector<256x128xf32> -> vector<256x128xf32>
    %7 = arith.addf %4, %6 : vector<256x128xf32>
    %c0_6 = arith.constant 0 : index
    %c0_7 = arith.constant 0 : index
    %8 = vector.load %arg6[%c0_6, %c0_7] : memref<256x128xf32, #tpu.memory_space<vmem>>, vector<256x128xf32>
    tpu.vector_store %arg6[%c0_6, %c0_7], %7 {strides = array<i32>} : memref<256x128xf32, #tpu.memory_space<vmem>>, vector<256x128xf32>,
    %c0_i32_8 = arith.constant 0 : i32
    %9 = arith.cmpi eq, %arg1, %c0_i32_8 : i32
    %10 = arith.extui %9 : i1 to i32
    %c0_i32_9 = arith.constant 0 : i32
    %11 = arith.cmpi ne, %10, %c0_i32_9 : i32
    scf.if %11 {
      %c0_10 = arith.constant 0 : index
      %c0_11 = arith.constant 0 : index
      %12 = vector.load %arg6[%c0_10, %c0_11] : memref<256x128xf32, #tpu.memory_space<vmem>>, vector<256x128xf32>
      %c0_12 = arith.constant 0 : index
      %c0_13 = arith.constant 0 : index
      %13 = vector.load %arg4[%c0_12, %c0_13] : memref<256x128xf32, #tpu.memory_space<vmem>>, vector<256x128xf32>
      %14 = arith.subf %12, %13 : vector<256x128xf32>
      %15 = arith.truncf %14 : vector<256x128xf32> to vector<256x128xbf16>
      %c0_14 = arith.constant 0 : index
      %c0_15 = arith.constant 0 : index
      %16 = vector.load %arg5[%c0_14, %c0_15] : memref<256x128xbf16, #tpu.memory_space<vmem>>, vector<256x128xbf16>
      tpu.vector_store %arg5[%c0_14, %c0_15], %15 {strides = array<i32>} : memref<256x128xbf16, #tpu.memory_space<vmem>>, vector<256x128xbf16>,
    } else {
    }
    return
  }
  func.func @transform_0(%arg0: i32, %arg1: i32) -> (i32, i32) {
    %c0_i32 = arith.constant 0 : i32
    return %arg0, %arg1 : i32, i32
  }
  func.func @transform_1(%arg0: i32, %arg1: i32) -> (i32, i32) {
    %c0_i32 = arith.constant 0 : i32
    %c0_i32_0 = arith.constant 0 : i32
    %c0_i32_1 = arith.constant 0 : i32
    return %c0_i32, %c0_i32_0 : i32, i32
  }
  func.func @transform_2(%arg0: i32, %arg1: i32) -> (i32, i32) {
    %c0_i32 = arith.constant 0 : i32
    %c0_i32_0 = arith.constant 0 : i32
    return %arg0, %c0_i32 : i32, i32
  }
  func.func @transform_3(%arg0: i32, %arg1: i32) -> (i32, i32) {
    %c0_i32 = arith.constant 0 : i32
    %c0_i32_0 = arith.constant 0 : i32
    return %arg0, %c0_i32 : i32, i32
  }
  func.func @transform_4(%arg0: i32, %arg1: i32) -> (i32, i32) {
    %c0_i32 = arith.constant 0 : i32
    %c0_i32_0 = arith.constant 0 : i32
    return %arg0, %c0_i32 : i32, i32
  }
}

module attributes {stable_mosaic.version = 11 : i64} {
  func.func @_lightgcn_layer_kernel(%arg0: i32, %arg1: i32, %arg2: memref<256x256xbf16, #tpu.memory_space<vmem>>, %arg3: memref<256x128xbf16, #tpu.memory_space<vmem>>, %arg4: memref<256x128xf32, #tpu.memory_space<vmem>>, %arg5: memref<256x128xbf16, #tpu.memory_space<vmem>>, %arg6: memref<256x128xf32, #tpu.memory_space<vmem>>) attributes {dimension_semantics = [#tpu.dimension_semantics<parallel>, #tpu.dimension_semantics<arbitrary>], iteration_bounds = array<i64: 1, 1>, scalar_prefetch = 0 : i64, scratch_operands = 0 : i64, tpu.core_type = #tpu.core_type<tc>, window_params = [{transform_indices = @transform_0, window_bounds = array<i64: 256, 256>}, {pipeline_mode = #tpu.pipeline_mode<synchronous>, transform_indices = @transform_1, window_bounds = array<i64: 256, 128>}, {transform_indices = @transform_2, window_bounds = array<i64: 256, 128>}, {transform_indices = @transform_3, window_bounds = array<i64: 256, 128>}, {transform_indices = @transform_4, window_bounds = array<i64: 256, 128>}]} {
    %c0_i32 = arith.constant 0 : i32
    %0 = arith.cmpi eq, %arg1, %c0_i32 : i32
    %1 = arith.extui %0 : i1 to i32
    %c0_i32_0 = arith.constant 0 : i32
    %2 = arith.cmpi ne, %1, %c0_i32_0 : i32
    scf.if %2 {
      %c0_10 = arith.constant 0 : index
      %c0_11 = arith.constant 0 : index
      %12 = vector.load %arg4[%c0_10, %c0_11] : memref<256x128xf32, #tpu.memory_space<vmem>>, vector<256x128xf32>
      %c0_12 = arith.constant 0 : index
      %c0_13 = arith.constant 0 : index
      %13 = vector.load %arg6[%c0_12, %c0_13] : memref<256x128xf32, #tpu.memory_space<vmem>>, vector<256x128xf32>
      tpu.vector_store %arg6[%c0_12, %c0_13], %12 {strides = array<i32>} : memref<256x128xf32, #tpu.memory_space<vmem>>, vector<256x128xf32>,
    } else {
    }
    %c0 = arith.constant 0 : index
    %c0_1 = arith.constant 0 : index
    %3 = vector.load %arg3[%c0, %c0_1] : memref<256x128xbf16, #tpu.memory_space<vmem>>, vector<256x128xbf16>
    %c0_2 = arith.constant 0 : index
    %c0_3 = arith.constant 0 : index
    %4 = vector.load %arg6[%c0_2, %c0_3] : memref<256x128xf32, #tpu.memory_space<vmem>>, vector<256x128xf32>
    %c0_4 = arith.constant 0 : index
    %c0_5 = arith.constant 0 : index
    %5 = vector.load %arg2[%c0_4, %c0_5] : memref<256x256xbf16, #tpu.memory_space<vmem>>, vector<256x256xbf16>
    %cst = arith.constant dense<0.000000e+00> : vector<256x128xf32>
    %6 = tpu.matmul %5, %3, %cst {dimension_numbers = #tpu.dot_dimension_numbers<[1], [0], [0], [1], [0, 0, 1, 1], [], []>} : vector<256x256xbf16>, vector<256x128xbf16>, vector<256x128xf32> -> vector<256x128xf32>
    %7 = arith.addf %4, %6 : vector<256x128xf32>
    %c0_6 = arith.constant 0 : index
    %c0_7 = arith.constant 0 : index
    %8 = vector.load %arg6[%c0_6, %c0_7] : memref<256x128xf32, #tpu.memory_space<vmem>>, vector<256x128xf32>
    tpu.vector_store %arg6[%c0_6, %c0_7], %7 {strides = array<i32>} : memref<256x128xf32, #tpu.memory_space<vmem>>, vector<256x128xf32>,
    %c0_i32_8 = arith.constant 0 : i32
    %9 = arith.cmpi eq, %arg1, %c0_i32_8 : i32
    %10 = arith.extui %9 : i1 to i32
    %c0_i32_9 = arith.constant 0 : i32
    %11 = arith.cmpi ne, %10, %c0_i32_9 : i32
    scf.if %11 {
      %c0_10 = arith.constant 0 : index
      %c0_11 = arith.constant 0 : index
      %12 = vector.load %arg6[%c0_10, %c0_11] : memref<256x128xf32, #tpu.memory_space<vmem>>, vector<256x128xf32>
      %c0_12 = arith.constant 0 : index
      %c0_13 = arith.constant 0 : index
      %13 = vector.load %arg4[%c0_12, %c0_13] : memref<256x128xf32, #tpu.memory_space<vmem>>, vector<256x128xf32>
      %14 = arith.subf %12, %13 : vector<256x128xf32>
      %15 = arith.truncf %14 : vector<256x128xf32> to vector<256x128xbf16>
      %c0_14 = arith.constant 0 : index
      %c0_15 = arith.constant 0 : index
      %16 = vector.load %arg5[%c0_14, %c0_15] : memref<256x128xbf16, #tpu.memory_space<vmem>>, vector<256x128xbf16>
      tpu.vector_store %arg5[%c0_14, %c0_15], %15 {strides = array<i32>} : memref<256x128xbf16, #tpu.memory_space<vmem>>, vector<256x128xbf16>,
    } else {
    }
    return
  }
  func.func @transform_0(%arg0: i32, %arg1: i32) -> (i32, i32) {
    %c0_i32 = arith.constant 0 : i32
    return %arg0, %arg1 : i32, i32
  }
  func.func @transform_1(%arg0: i32, %arg1: i32) -> (i32, i32) {
    %c0_i32 = arith.constant 0 : i32
    %c0_i32_0 = arith.constant 0 : i32
    %c0_i32_1 = arith.constant 0 : i32
    return %c0_i32, %c0_i32_0 : i32, i32
  }
  func.func @transform_2(%arg0: i32, %arg1: i32) -> (i32, i32) {
    %c0_i32 = arith.constant 0 : i32
    %c0_i32_0 = arith.constant 0 : i32
    return %arg0, %c0_i32 : i32, i32
  }
  func.func @transform_3(%arg0: i32, %arg1: i32) -> (i32, i32) {
    %c0_i32 = arith.constant 0 : i32
    %c0_i32_0 = arith.constant 0 : i32
    return %arg0, %c0_i32 : i32, i32
  }
  func.func @transform_4(%arg0: i32, %arg1: i32) -> (i32, i32) {
    %c0_i32 = arith.constant 0 : i32
    %c0_i32_0 = arith.constant 0 : i32
    return %arg0, %c0_i32 : i32, i32
  }
}

</mosaic_0001>

<bundles_post_ra>
// kernel: lightgcn_forward_pallas.3
= control target key start
LH: loop header
LB: loop body
LE: loop exit
PB: predicated region body
PF: predicated region fallthrough
CT: control target
= control target key end

     0   :  { %s1873_s1 = inlined_call_operand.vmem [shape: bf16[256,128], index: 1, kind: input, shape index: {}]   ;;  %s1874_s0 = inlined_call_operand.vmem [shape: bf16[256,256], index: 0, kind: input, shape index: {}]   ;;  %s1875_s2 = inlined_call_operand.vmem [shape: f32[256,128], index: 2, kind: input, shape index: {}, may-alias: {2,4}]   ;;  %s1876_s4 = inlined_call_operand.vmem [shape: f32[256,128], index: 4, kind: output, shape index: {1}, may-alias: {2,4}]   ;;  %s1877_s3 = inlined_call_operand.vmem [shape: bf16[256,128], index: 3, kind: output, shape index: {0}]  }
   0x1   :  { %v1264_v0 = vld [vmem:[%s1873_s1 + $0x78] sm:$0xff]   ;;  %v1266_v2 = vld [vmem:[%s1873_s1 + $0x70] sm:$0xff]   ;;  %v1268_v4 = vld [vmem:[%s1873_s1 + $0x68] sm:$0xff]  }
   0x2   :  { %v1265_v1 = vld [vmem:[%s1873_s1 + $0x38] sm:$0xff]   ;;  %1136 = vmatprep.subr.bf16.mxu0 %v1264_v0  ;;  %1248 = vmatprep.subr.bf16.mxu1 %v1264_v0  ;;  %v1267_v3 = vld [vmem:[%s1873_s1 + $0x30] sm:$0xff]   ;;  %v1269_v5 = vld [vmem:[%s1873_s1 + $0x28] sm:$0xff]  }
   0x3   :  { %1137 = vmatpush3.bf16.msra.mxu0 %v1265_v1  ;;  %1256 = vmatpush3.bf16.msra.mxu1 %v1265_v1  ;;  %v1270_v6 = vld [vmem:[%s1873_s1 + $0x60] sm:$0xff]   ;;  %v1272_v8 = vld [vmem:[%s1873_s1 + $0x58] sm:$0xff]   ;;  %v1274_v10 = vld [vmem:[%s1873_s1 + $0x50] sm:$0xff]  }
   0x4   :  { %1138 = vmatprep.subr.bf16.mxu0 %v1266_v2  ;;  %1249 = vmatprep.subr.bf16.mxu1 %v1266_v2  ;;  %v1271_v7 = vld [vmem:[%s1873_s1 + $0x20] sm:$0xff]   ;;  %v1273_v9 = vld [vmem:[%s1873_s1 + $0x18] sm:$0xff]   ;;  %v1275_v13 = vld [vmem:[%s1873_s1 + $0x10] sm:$0xff]  }
   0x5   :  { %v1282_v11 = vld [vmem:[%s1874_s0 + $0x4] ss:$8 sps:$4 sm:$0xff]   ;;  %v1280_v18 = vld [vmem:[%s1874_s0] ss:$8 sps:$4 sm:$0xff]   ;;  %v1286_v20 = vld [vmem:[%s1874_s0 + $0x14] ss:$8 sps:$4 sm:$0xff]  }
   0x6   :  { %v1285_v12 = vld [vmem:[%s1874_s0 + $0x84] ss:$8 sps:$4 sm:$0xff]   ;;  %469 = vmatprep.mubr.bf16.mxu0 %v1282_v11  ;;  %v1283_v19 = vld [vmem:[%s1874_s0 + $0x80] ss:$8 sps:$4 sm:$0xff]   ;;  %v1288_v21 = vld [vmem:[%s1874_s0 + $0x94] ss:$8 sps:$4 sm:$0xff]  }
   0x7   :  { %1139 = vmatpush3.bf16.msra.mxu0 %v1267_v3  ;;  %1257 = vmatpush3.bf16.msra.mxu1 %v1267_v3  ;;  %v1276_v14 = vld [vmem:[%s1873_s1 + $0x48] sm:$0xff]   ;;  %v1278_v16 = vld [vmem:[%s1873_s1 + $0x40] sm:$0xff]   ;;  %v1290_v22 = vld [vmem:[%s1874_s0 + $0x10] ss:$8 sps:$4 sm:$0xff]  }
   0x8   :  { %1140 = vmatprep.subr.bf16.mxu0 %v1268_v4  ;;  %1250 = vmatprep.subr.bf16.mxu1 %v1268_v4  ;;  %v1277_v15 = vld [vmem:[%s1873_s1 + $0x8] sm:$0xff]   ;;  %v1279_v17 = vld [vmem:[%s1873_s1] sm:$0xff]   ;;  %v1291_v23 = vld [vmem:[%s1874_s0 + $0x90] ss:$8 sps:$4 sm:$0xff]  }
   0x9   :  { %533 = vmatprep.mubr.bf16.mxu1 %v1285_v12  ;;  %v1292_v24 = vld [vmem:[%s1874_s0 + $0x24] ss:$8 sps:$4 sm:$0xff]   ;;  %v1296_v26 = vld [vmem:[%s1874_s0 + $0x20] ss:$8 sps:$4 sm:$0xff]   ;;  %v1298_v28 = vld [vmem:[%s1874_s0 + $0x34] ss:$8 sps:$4 sm:$0xff]  }
   0xa   :  { %v1294_v25 = vld [vmem:[%s1874_s0 + $0xa4] ss:$8 sps:$4 sm:$0xff]   ;;  %v1297_v27 = vld [vmem:[%s1874_s0 + $0xa0] ss:$8 sps:$4 sm:$0xff]   ;;  %v1300_v29 = vld [vmem:[%s1874_s0 + $0xb4] ss:$8 sps:$4 sm:$0xff]  }
   0xb   :  { %1141 = vmatpush3.bf16.msra.mxu0 %v1269_v5  ;;  %1258 = vmatpush3.bf16.msra.mxu1 %v1269_v5  ;;  %v1302_v30 = vld [vmem:[%s1874_s0 + $0x30] ss:$8 sps:$4 sm:$0xff]   ;;  %v1304_v32 = vld [vmem:[%s1874_s0 + $0x44] ss:$8 sps:$4 sm:$0xff]   ;;  %v1308_v34 = vld [vmem:[%s1874_s0 + $0x40] ss:$8 sps:$4 sm:$0xff]  }
   0xc   :  { %1142 = vmatprep.subr.bf16.mxu0 %v1270_v6  ;;  %1251 = vmatprep.subr.bf16.mxu1 %v1270_v6  ;;  %v1303_v31 = vld [vmem:[%s1874_s0 + $0xb0] ss:$8 sps:$4 sm:$0xff]   ;;  %v1306_v33 = vld [vmem:[%s1874_s0 + $0xc4] ss:$8 sps:$4 sm:$0xff]   ;;  %v1309_v35 = vld [vmem:[%s1874_s0 + $0xc0] ss:$8 sps:$4 sm:$0xff]  }
   0xd   :  { %v1310_v36 = vld [vmem:[%s1874_s0 + $0x54] ss:$8 sps:$4 sm:$0xff]   ;;  %v1314_v38 = vld [vmem:[%s1874_s0 + $0x50] ss:$8 sps:$4 sm:$0xff]   ;;  %v1316_v40 = vld [vmem:[%s1874_s0 + $0x64] ss:$8 sps:$4 sm:$0xff]  }
   0xe   :  { %v1312_v37 = vld [vmem:[%s1874_s0 + $0xd4] ss:$8 sps:$4 sm:$0xff]   ;;  %v1315_v39 = vld [vmem:[%s1874_s0 + $0xd0] ss:$8 sps:$4 sm:$0xff]   ;;  %v1318_v41 = vld [vmem:[%s1874_s0 + $0xe4] ss:$8 sps:$4 sm:$0xff]  }
   0xf   :  { %1143 = vmatpush3.bf16.msra.mxu0 %v1271_v7  ;;  %1259 = vmatpush3.bf16.msra.mxu1 %v1271_v7  ;;  %v1320_v42 = vld [vmem:[%s1874_s0 + $0x60] ss:$8 sps:$4 sm:$0xff]   ;;  %v1322_v44 = vld [vmem:[%s1874_s0 + $0x74] ss:$8 sps:$4 sm:$0xff]   ;;  %v1326_v46 = vld [vmem:[%s1874_s0 + $0x70] ss:$8 sps:$4 sm:$0xff]  }
  0x10   :  { %1144 = vmatprep.subr.bf16.mxu0 %v1272_v8  ;;  %1252 = vmatprep.subr.bf16.mxu1 %v1272_v8  ;;  %v1321_v43 = vld [vmem:[%s1874_s0 + $0xe0] ss:$8 sps:$4 sm:$0xff]   ;;  %v1324_v45 = vld [vmem:[%s1874_s0 + $0xf4] ss:$8 sps:$4 sm:$0xff]   ;;  %v1327_v47 = vld [vmem:[%s1874_s0 + $0xf0] ss:$8 sps:$4 sm:$0xff]  }
  0x11   :  { %v21_v50 = vld [vmem:[%s1875_s2] sm:$0xff]  ;;  %v22_v60 = vld [vmem:[%s1875_s2 + $0x8] sm:$0xff] }
  0x12   :  { %v37_v52 = vld [vmem:[%s1875_s2 + $0x80] sm:$0xff]  ;;  %v38_v62 = vld [vmem:[%s1875_s2 + $0x88] sm:$0xff] }
  0x13   :  { %1145 = vmatpush3.bf16.msra.mxu0 %v1273_v9  ;;  %1260 = vmatpush3.bf16.msra.mxu1 %v1273_v9 }
  0x14   :  { %1146 = vmatprep.subr.bf16.mxu0 %v1274_v10  ;;  %1253 = vmatprep.subr.bf16.mxu1 %v1274_v10 }
  0x17   :  { %1147 = vmatpush3.bf16.msra.mxu0 %v1275_v13  ;;  %1261 = vmatpush3.bf16.msra.mxu1 %v1275_v13 }
  0x18   :  { %1148 = vmatprep.subr.bf16.mxu0 %v1276_v14  ;;  %1254 = vmatprep.subr.bf16.mxu1 %v1276_v14 }
  0x1b   :  { %1149 = vmatpush3.bf16.msra.mxu0 %v1277_v15  ;;  %1262 = vmatpush3.bf16.msra.mxu1 %v1277_v15 }
  0x1c   :  { %1150 = vmatprep.subr.bf16.mxu0 %v1278_v16  ;;  %1255 = vmatprep.subr.bf16.mxu1 %v1278_v16 }
  0x1f   :  { %1151 = vmatpush3.bf16.msra.mxu0 %v1279_v17  ;;  %1263 = vmatpush3.bf16.msra.mxu1 %v1279_v17 }
  0x22   :  { %470 = vmatmul.mubr.bf16.vlgmr.msra.gmra.mxu0 %v1280_v18  ;;  %534 = vmatmul.mubr.bf16.vlgmr.msra.gmra.mxu1 %v1283_v19 }
  0x23   :  { %477 = vmatprep.mubr.bf16.mxu0 %v1286_v20  ;;  %541 = vmatprep.mubr.bf16.mxu1 %v1288_v21 }
  0x2a   :  { %478 = vmatmul.mubr.bf16.gmra.mxu0 %v1290_v22  ;;  %542 = vmatmul.mubr.bf16.gmra.mxu1 %v1291_v23 }
  0x2b   :  { %485 = vmatprep.mubr.bf16.mxu0 %v1292_v24  ;;  %549 = vmatprep.mubr.bf16.mxu1 %v1294_v25 }
  0x32   :  { %486 = vmatmul.mubr.bf16.gmra.mxu0 %v1296_v26  ;;  %550 = vmatmul.mubr.bf16.gmra.mxu1 %v1297_v27 }
  0x33   :  { %493 = vmatprep.mubr.bf16.mxu0 %v1298_v28  ;;  %557 = vmatprep.mubr.bf16.mxu1 %v1300_v29 }
  0x3a   :  { %494 = vmatmul.mubr.bf16.gmra.mxu0 %v1302_v30  ;;  %558 = vmatmul.mubr.bf16.gmra.mxu1 %v1303_v31 }
  0x3b   :  { %501 = vmatprep.mubr.bf16.mxu0 %v1304_v32  ;;  %565 = vmatprep.mubr.bf16.mxu1 %v1306_v33 }
  0x42   :  { %502 = vmatmul.mubr.bf16.gmra.mxu0 %v1308_v34  ;;  %566 = vmatmul.mubr.bf16.gmra.mxu1 %v1309_v35 }
  0x43   :  { %509 = vmatprep.mubr.bf16.mxu0 %v1310_v36  ;;  %573 = vmatprep.mubr.bf16.mxu1 %v1312_v37 }
  0x4a   :  { %510 = vmatmul.mubr.bf16.gmra.mxu0 %v1314_v38  ;;  %574 = vmatmul.mubr.bf16.gmra.mxu1 %v1315_v39 }
  0x4b   :  { %517 = vmatprep.mubr.bf16.mxu0 %v1316_v40  ;;  %581 = vmatprep.mubr.bf16.mxu1 %v1318_v41 }
  0x52   :  { %518 = vmatmul.mubr.bf16.gmra.mxu0 %v1320_v42  ;;  %582 = vmatmul.mubr.bf16.gmra.mxu1 %v1321_v43 }
  0x53   :  { %525 = vmatprep.mubr.bf16.mxu0 %v1322_v44  ;;  %589 = vmatprep.mubr.bf16.mxu1 %v1324_v45 }
  0x5a   :  { %526 = vmatmul.mubr.bf16.gmra.mxu0 %v1326_v46  ;;  %590 = vmatmul.mubr.bf16.gmra.mxu1 %v1327_v47 }
  0xe2   :  { %v1152_v48 = vpop.f32.mrf.mxu0  ;;  %v1200_v49 = vpop.f32.mrf.mxu1 }
  0xe4   :  { %v1153_v51 = vpop.f32.mrf.mxu0  ;;  %v1201_v53 = vpop.f32.mrf.mxu1 }
  0xe5   :  { %v1154_v54 = vadd.f32 %v1153_v51, %v1152_v48  ;;  %v1202_v55 = vadd.f32 %v1201_v53, %v1200_v49 }
  0xe6   :  { %v1155_v56 = vpop.f32.mrf.mxu0  ;;  %v1203_v57 = vpop.f32.mrf.mxu1 }
  0xe7   :  { %v598_v58 = vadd.f32 %v1154_v54, %v21_v50  ;;  %v614_v59 = vadd.f32 %v1202_v55, %v37_v52 }
  0xe8   :  { %v1156_v61 = vpop.f32.mrf.mxu0  ;;  %v1204_v63 = vpop.f32.mrf.mxu1 }
  0xe9   :  { %630 = vst [vmem:[%s1876_s4] sm:$0xff] %v598_v58  ;;  %646 = vst [vmem:[%s1876_s4 + $0x80] sm:$0xff] %v614_v59  ;;  %v1157_v0 = vadd.f32 %v1156_v61, %v1155_v56  ;;  %v1205_v1 = vadd.f32 %v1204_v63, %v1203_v57 }
  0xea   :  { %v1158_v2 = vpop.f32.mrf.mxu0  ;;  %v1206_v3 = vpop.f32.mrf.mxu1 }
  0xeb   :  { %v599_v4 = vadd.f32 %v1157_v0, %v22_v60  ;;  %v615_v5 = vadd.f32 %v1205_v1, %v38_v62 }
  0xec   :  { %v1159_v7 = vpop.f32.mrf.mxu0  ;;  %v1207_v9 = vpop.f32.mrf.mxu1 }
  0xed   :  { %v1160_v10 = vadd.f32 %v1159_v7, %v1158_v2  ;;  %v1208_v11 = vadd.f32 %v1207_v9, %v1206_v3 }
  0xee   :  { %v1161_v12 = vpop.f32.mrf.mxu0  ;;  %v1209_v13 = vpop.f32.mrf.mxu1 }
  0xf0   :  { %v23_v6 = vld [vmem:[%s1875_s2 + $0x10] sm:$0xff]  ;;  %v1162_v17 = vpop.f32.mrf.mxu0  ;;  %v1210_v19 = vpop.f32.mrf.mxu1 }
  0xf1   :  { %v39_v8 = vld [vmem:[%s1875_s2 + $0x90] sm:$0xff]  ;;  %v1527_v14 = vadd.f32 %v1160_v10, %v23_v6  ;;  %v1163_v22 = vadd.f32 %v1162_v17, %v1161_v12  ;;  %v1211_v23 = vadd.f32 %v1210_v19, %v1209_v13 }
  0xf2   :  { %631 = vst [vmem:[%s1876_s4 + $0x8] sm:$0xff] %v599_v4  ;;  %647 = vst [vmem:[%s1876_s4 + $0x88] sm:$0xff] %v615_v5  ;;  %v1529_v15 = vadd.f32 %v1208_v11, %v39_v8  ;;  %v1164_v24 = vpop.f32.mrf.mxu0  ;;  %v1212_v25 = vpop.f32.mrf.mxu1 }
  0xf4   :  { %v1165_v33 = vpop.f32.mrf.mxu0  ;;  %v1213_v35 = vpop.f32.mrf.mxu1 }
  0xf5   :  { %v1166_v38 = vadd.f32 %v1165_v33, %v1164_v24  ;;  %v1214_v39 = vadd.f32 %v1213_v35, %v1212_v25 }
  0xf6   :  { %v1167_v40 = vpop.f32.mrf.mxu0  ;;  %v1215_v41 = vpop.f32.mrf.mxu1 }
  0xf8   :  { %v1168_v47 = vpop.f32.mrf.mxu0  ;;  %v1216_v49 = vpop.f32.mrf.mxu1 }
  0xf9   :  { %v24_v16 = vld [vmem:[%s1875_s2 + $0x18] sm:$0xff]  ;;  %v697_v20 = vld [vmem:[%s1875_s2] sm:$0xff]  ;;  %v1169_v52 = vadd.f32 %v1168_v47, %v1167_v40  ;;  %v1217_v53 = vadd.f32 %v1216_v49, %v1215_v41 }
  0xfa   :  { %v40_v18 = vld [vmem:[%s1875_s2 + $0x98] sm:$0xff]  ;;  %v713_v21 = vld [vmem:[%s1875_s2 + $0x80] sm:$0xff]  ;;  %v601_v26 = vadd.f32 %v1163_v22, %v24_v16  ;;  %v729_v29 = vsub.f32 %v598_v58, %v697_v20  ;;  %v1170_v54 = vpop.f32.mrf.mxu0  ;;  %v1218_v55 = vpop.f32.mrf.mxu1 }
  0xfb   :  { %632 = vst [vmem:[%s1876_s4 + $0x10] sm:$0xff] %v1527_v14  ;;  %648 = vst [vmem:[%s1876_s4 + $0x90] sm:$0xff] %v1529_v15  ;;  %v617_v27 = vadd.f32 %v1211_v23, %v40_v18  ;;  %v745_v30 = vsub.f32 %v614_v59, %v713_v21 }
  0xfc   :  { %v1171_v63 = vpop.f32.mrf.mxu0  ;;  %v1219_v1 = vpop.f32.mrf.mxu1 }
  0xfe   :  { %v1173_v6 = vpop.f32.mrf.mxu0  ;;  %v1221_v7 = vpop.f32.mrf.mxu1 }
 0x100   :  { %v1174_v13 = vpop.f32.mrf.mxu0 }
 0x101   :  { %v1175_v18 = vadd.f32 %v1174_v13, %v1173_v6 }
 0x102   :  { %v25_v28 = vld [vmem:[%s1875_s2 + $0x20] sm:$0xff]  ;;  %v698_v31 = vld [vmem:[%s1875_s2 + $0x8] sm:$0xff]  ;;  %v1176_v20 = vpop.f32.mrf.mxu0 }
 0x103   :  { %v714_v32 = vld [vmem:[%s1875_s2 + $0x88] sm:$0xff]  ;;  %v41_v34 = vld [vmem:[%s1875_s2 + $0xa0] sm:$0xff]  ;;  %v730_v36 = vsub.f32 %v599_v4, %v698_v31  ;;  %v1569_v44 = vadd.f32 %v1166_v38, %v25_v28  ;;  %v1172_v4 = vadd.f32 %v1171_v63, %v1170_v54 }
 0x104   :  { %v746_v37 = vsub.f32 %v615_v5, %v714_v32  ;;  %633 = vst [vmem:[%s1876_s4 + $0x18] sm:$0xff] %v601_v26  ;;  %649 = vst [vmem:[%s1876_s4 + $0x98] sm:$0xff] %v617_v27  ;;  %v1571_v45 = vadd.f32 %v1214_v39, %v41_v34  ;;  %v1220_v5 = vadd.f32 %v1219_v1, %v1218_v55 }
 0x105   :  { %v1044_v42 = vpack.c.bf16 %v730_v36, %v729_v29  ;;  %v1177_v29 = vpop.f32.mrf.mxu0 }
 0x106   :  { %v1084_v43 = vpack.c.bf16 %v746_v37, %v745_v30  ;;  %v1178_v34 = vadd.f32 %v1177_v29, %v1176_v20 }
 0x107   :  { %1045 = vst [vmem:[%s1877_s3] sm:$0xff] %v1044_v42   ;;  %v1179_v36 = vpop.f32.mrf.mxu0 }
 0x108   :  { %1128 = vst [vmem:[%s1877_s3 + $0x40] sm:$0xff] %v1084_v43  }
 0x109   :  { %v1180_v43 = vpop.f32.mrf.mxu0 }
 0x10b   :  { %v26_v46 = vld [vmem:[%s1875_s2 + $0x28] sm:$0xff]  ;;  %v699_v50 = vld [vmem:[%s1875_s2 + $0x10] sm:$0xff] }
 0x10c   :  { %v42_v48 = vld [vmem:[%s1875_s2 + $0xa8] sm:$0xff]  ;;  %v715_v51 = vld [vmem:[%s1875_s2 + $0x90] sm:$0xff]  ;;  %v603_v56 = vadd.f32 %v1169_v52, %v26_v46  ;;  %v731_v59 = vsub.f32 %v1527_v14, %v699_v50  ;;  %v1182_v50 = vpop.f32.mrf.mxu0 }
 0x10d   :  { %634 = vst [vmem:[%s1876_s4 + $0x20] sm:$0xff] %v1569_v44  ;;  %650 = vst [vmem:[%s1876_s4 + $0xa0] sm:$0xff] %v1571_v45  ;;  %v619_v57 = vadd.f32 %v1217_v53, %v42_v48  ;;  %v747_v60 = vsub.f32 %v1529_v15, %v715_v51  ;;  %v1222_v15 = vpop.f32.mrf.mxu1  ;;  %v1181_v48 = vadd.f32 %v1180_v43, %v1179_v36 }
 0x10e   :  { %v1223_v19 = vadd.f32 %v1222_v15, %v1221_v7 }
 0x10f   :  { %v1224_v21 = vpop.f32.mrf.mxu1 }
 0x111   :  { %v1225_v31 = vpop.f32.mrf.mxu1 }
 0x112   :  { %v1226_v35 = vadd.f32 %v1225_v31, %v1224_v21 }
 0x113   :  { %v1227_v37 = vpop.f32.mrf.mxu1 }
 0x114   :  { %v27_v58 = vld [vmem:[%s1875_s2 + $0x30] sm:$0xff]  ;;  %v700_v61 = vld [vmem:[%s1875_s2 + $0x18] sm:$0xff] }
 0x115   :  { %v716_v62 = vld [vmem:[%s1875_s2 + $0x98] sm:$0xff]  ;;  %v43_v0 = vld [vmem:[%s1875_s2 + $0xb0] sm:$0xff]  ;;  %v732_v2 = vsub.f32 %v601_v26, %v700_v61  ;;  %v1619_v10 = vadd.f32 %v1172_v4, %v27_v58 }
 0x116   :  { %v748_v3 = vsub.f32 %v617_v27, %v716_v62  ;;  %635 = vst [vmem:[%s1876_s4 + $0x28] sm:$0xff] %v603_v56  ;;  %651 = vst [vmem:[%s1876_s4 + $0xa8] sm:$0xff] %v619_v57  ;;  %v1621_v11 = vadd.f32 %v1220_v5, %v43_v0 }
 0x117   :  { %v1049_v8 = vpack.c.bf16 %v732_v2, %v731_v59  ;;  %v1183_v59 = vpop.f32.mrf.mxu0 }
 0x118   :  { %v1089_v9 = vpack.c.bf16 %v748_v3, %v747_v60  ;;  %v1184_v0 = vadd.f32 %v1183_v59, %v1182_v50 }
 0x119   :  { %1121 = vst [vmem:[%s1877_s3 + $0x8] sm:$0xff] %v1049_v8   ;;  %v1185_v2 = vpop.f32.mrf.mxu0 }
 0x11a   :  { %1129 = vst [vmem:[%s1877_s3 + $0x48] sm:$0xff] %v1089_v9  }
 0x11b   :  { %v1186_v9 = vpop.f32.mrf.mxu0 }
 0x11d   :  { %v28_v12 = vld [vmem:[%s1875_s2 + $0x38] sm:$0xff]  ;;  %v701_v16 = vld [vmem:[%s1875_s2 + $0x20] sm:$0xff] }
 0x11e   :  { %v44_v14 = vld [vmem:[%s1875_s2 + $0xb8] sm:$0xff]  ;;  %v717_v17 = vld [vmem:[%s1875_s2 + $0xa0] sm:$0xff]  ;;  %v605_v22 = vadd.f32 %v1175_v18, %v28_v12  ;;  %v733_v25 = vsub.f32 %v1569_v44, %v701_v16  ;;  %v1188_v16 = vpop.f32.mrf.mxu0 }
 0x11f   :  { %636 = vst [vmem:[%s1876_s4 + $0x30] sm:$0xff] %v1619_v10  ;;  %652 = vst [vmem:[%s1876_s4 + $0xb0] sm:$0xff] %v1621_v11  ;;  %v621_v23 = vadd.f32 %v1223_v19, %v44_v14  ;;  %v749_v26 = vsub.f32 %v1571_v45, %v717_v17  ;;  %v1228_v45 = vpop.f32.mrf.mxu1  ;;  %v1187_v14 = vadd.f32 %v1186_v9, %v1185_v2 }
 0x120   :  { %v1229_v49 = vadd.f32 %v1228_v45, %v1227_v37 }
 0x121   :  { %v1230_v51 = vpop.f32.mrf.mxu1 }
 0x123   :  { %v1231_v61 = vpop.f32.mrf.mxu1 }
 0x124   :  { %v1232_v1 = vadd.f32 %v1231_v61, %v1230_v51 }
 0x125   :  { %v1233_v3 = vpop.f32.mrf.mxu1 }
 0x126   :  { %v29_v24 = vld [vmem:[%s1875_s2 + $0x40] sm:$0xff]  ;;  %v702_v27 = vld [vmem:[%s1875_s2 + $0x28] sm:$0xff] }
 0x127   :  { %v718_v28 = vld [vmem:[%s1875_s2 + $0xa8] sm:$0xff]  ;;  %v45_v30 = vld [vmem:[%s1875_s2 + $0xc0] sm:$0xff]  ;;  %v734_v32 = vsub.f32 %v603_v56, %v702_v27  ;;  %v1669_v40 = vadd.f32 %v1178_v34, %v29_v24 }
 0x128   :  { %v750_v33 = vsub.f32 %v619_v57, %v718_v28  ;;  %637 = vst [vmem:[%s1876_s4 + $0x38] sm:$0xff] %v605_v22  ;;  %653 = vst [vmem:[%s1876_s4 + $0xb8] sm:$0xff] %v621_v23  ;;  %v1671_v41 = vadd.f32 %v1226_v35, %v45_v30 }
 0x129   :  { %v1054_v38 = vpack.c.bf16 %v734_v32, %v733_v25  ;;  %v1189_v25 = vpop.f32.mrf.mxu0 }
 0x12a   :  { %v1094_v39 = vpack.c.bf16 %v750_v33, %v749_v26  ;;  %v1190_v30 = vadd.f32 %v1189_v25, %v1188_v16 }
 0x12b   :  { %1122 = vst [vmem:[%s1877_s3 + $0x10] sm:$0xff] %v1054_v38   ;;  %v1191_v32 = vpop.f32.mrf.mxu0 }
 0x12c   :  { %1130 = vst [vmem:[%s1877_s3 + $0x50] sm:$0xff] %v1094_v39  }
 0x12d   :  { %v1192_v39 = vpop.f32.mrf.mxu0 }
 0x12f   :  { %v30_v42 = vld [vmem:[%s1875_s2 + $0x48] sm:$0xff]  ;;  %v703_v46 = vld [vmem:[%s1875_s2 + $0x30] sm:$0xff] }
 0x130   :  { %v46_v44 = vld [vmem:[%s1875_s2 + $0xc8] sm:$0xff]  ;;  %v719_v47 = vld [vmem:[%s1875_s2 + $0xb0] sm:$0xff]  ;;  %v607_v52 = vadd.f32 %v1181_v48, %v30_v42  ;;  %v735_v55 = vsub.f32 %v1619_v10, %v703_v46  ;;  %v1194_v46 = vpop.f32.mrf.mxu0 }
 0x131   :  { %638 = vst [vmem:[%s1876_s4 + $0x40] sm:$0xff] %v1669_v40  ;;  %654 = vst [vmem:[%s1876_s4 + $0xc0] sm:$0xff] %v1671_v41  ;;  %v623_v53 = vadd.f32 %v1229_v49, %v46_v44  ;;  %v751_v56 = vsub.f32 %v1621_v11, %v719_v47  ;;  %v1234_v11 = vpop.f32.mrf.mxu1  ;;  %v1193_v44 = vadd.f32 %v1192_v39, %v1191_v32 }
 0x132   :  { %v1235_v15 = vadd.f32 %v1234_v11, %v1233_v3 }
 0x133   :  { %v1236_v17 = vpop.f32.mrf.mxu1 }
 0x135   :  { %v1237_v27 = vpop.f32.mrf.mxu1 }
 0x136   :  { %v1238_v31 = vadd.f32 %v1237_v27, %v1236_v17 }
 0x137   :  { %v1239_v33 = vpop.f32.mrf.mxu1 }
 0x138   :  { %v31_v54 = vld [vmem:[%s1875_s2 + $0x50] sm:$0xff]  ;;  %v704_v57 = vld [vmem:[%s1875_s2 + $0x38] sm:$0xff] }
 0x139   :  { %v720_v58 = vld [vmem:[%s1875_s2 + $0xb8] sm:$0xff]  ;;  %v47_v60 = vld [vmem:[%s1875_s2 + $0xd0] sm:$0xff]  ;;  %v736_v62 = vsub.f32 %v605_v22, %v704_v57  ;;  %v1719_v6 = vadd.f32 %v1184_v0, %v31_v54 }
 0x13a   :  { %v752_v63 = vsub.f32 %v621_v23, %v720_v58  ;;  %639 = vst [vmem:[%s1876_s4 + $0x48] sm:$0xff] %v607_v52  ;;  %655 = vst [vmem:[%s1876_s4 + $0xc8] sm:$0xff] %v623_v53  ;;  %v1721_v7 = vadd.f32 %v1232_v1, %v47_v60 }
 0x13b   :  { %v1059_v4 = vpack.c.bf16 %v736_v62, %v735_v55  ;;  %v1195_v55 = vpop.f32.mrf.mxu0 }
 0x13c   :  { %v1099_v5 = vpack.c.bf16 %v752_v63, %v751_v56  ;;  %v1196_v60 = vadd.f32 %v1195_v55, %v1194_v46 }
 0x13d   :  { %1123 = vst [vmem:[%s1877_s3 + $0x18] sm:$0xff] %v1059_v4   ;;  %v1197_v62 = vpop.f32.mrf.mxu0 }
 0x13e   :  { %1131 = vst [vmem:[%s1877_s3 + $0x58] sm:$0xff] %v1099_v5  }
 0x13f   :  { %v1198_v5 = vpop.f32.mrf.mxu0 }
 0x141   :  { %v32_v8 = vld [vmem:[%s1875_s2 + $0x58] sm:$0xff]  ;;  %v705_v12 = vld [vmem:[%s1875_s2 + $0x40] sm:$0xff] }
 0x142   :  { %v48_v10 = vld [vmem:[%s1875_s2 + $0xd8] sm:$0xff]  ;;  %v721_v13 = vld [vmem:[%s1875_s2 + $0xc0] sm:$0xff]  ;;  %v609_v18 = vadd.f32 %v1187_v14, %v32_v8  ;;  %v737_v21 = vsub.f32 %v1669_v40, %v705_v12  ;;  %v1199_v8 = vadd.f32 %v1198_v5, %v1197_v62 }
 0x143   :  { %640 = vst [vmem:[%s1876_s4 + $0x50] sm:$0xff] %v1719_v6  ;;  %656 = vst [vmem:[%s1876_s4 + $0xd0] sm:$0xff] %v1721_v7  ;;  %v625_v19 = vadd.f32 %v1235_v15, %v48_v10  ;;  %v753_v22 = vsub.f32 %v1671_v41, %v721_v13  ;;  %v1240_v41 = vpop.f32.mrf.mxu1 }
 0x144   :  { %v1241_v45 = vadd.f32 %v1240_v41, %v1239_v33 }
 0x145   :  { %v1242_v47 = vpop.f32.mrf.mxu1 }
 0x147   :  { %v1243_v57 = vpop.f32.mrf.mxu1 }
 0x148   :  { %v1244_v61 = vadd.f32 %v1243_v57, %v1242_v47 }
 0x149   :  { %v1245_v63 = vpop.f32.mrf.mxu1 }
 0x14a   :  { %v33_v20 = vld [vmem:[%s1875_s2 + $0x60] sm:$0xff]  ;;  %v706_v23 = vld [vmem:[%s1875_s2 + $0x48] sm:$0xff] }
 0x14b   :  { %v722_v24 = vld [vmem:[%s1875_s2 + $0xc8] sm:$0xff]  ;;  %v49_v26 = vld [vmem:[%s1875_s2 + $0xe0] sm:$0xff]  ;;  %v738_v28 = vsub.f32 %v607_v52, %v706_v23  ;;  %v610_v36 = vadd.f32 %v1190_v30, %v33_v20 }
 0x14c   :  { %v754_v29 = vsub.f32 %v623_v53, %v722_v24  ;;  %641 = vst [vmem:[%s1876_s4 + $0x58] sm:$0xff] %v609_v18  ;;  %657 = vst [vmem:[%s1876_s4 + $0xd8] sm:$0xff] %v625_v19  ;;  %v626_v37 = vadd.f32 %v1238_v31, %v49_v26 }
 0x14d   :  { %v1064_v34 = vpack.c.bf16 %v738_v28, %v737_v21 }
 0x14e   :  { %v1104_v35 = vpack.c.bf16 %v754_v29, %v753_v22 }
 0x14f   :  { %1124 = vst [vmem:[%s1877_s3 + $0x20] sm:$0xff] %v1064_v34  }
 0x150   :  { %1132 = vst [vmem:[%s1877_s3 + $0x60] sm:$0xff] %v1104_v35  }
 0x153   :  { %v34_v38 = vld [vmem:[%s1875_s2 + $0x68] sm:$0xff]  ;;  %v707_v42 = vld [vmem:[%s1875_s2 + $0x50] sm:$0xff] }
 0x154   :  { %v50_v40 = vld [vmem:[%s1875_s2 + $0xe8] sm:$0xff]  ;;  %v723_v43 = vld [vmem:[%s1875_s2 + $0xd0] sm:$0xff]  ;;  %v611_v48 = vadd.f32 %v1193_v44, %v34_v38  ;;  %v739_v51 = vsub.f32 %v1719_v6, %v707_v42 }
 0x155   :  { %642 = vst [vmem:[%s1876_s4 + $0x60] sm:$0xff] %v610_v36  ;;  %658 = vst [vmem:[%s1876_s4 + $0xe0] sm:$0xff] %v626_v37  ;;  %v627_v49 = vadd.f32 %v1241_v45, %v50_v40  ;;  %v755_v52 = vsub.f32 %v1721_v7, %v723_v43  ;;  %v1246_v7 = vpop.f32.mrf.mxu1 }
 0x156   :  { %v1247_v9 = vadd.f32 %v1246_v7, %v1245_v63 }
 0x15c   :  { %v35_v50 = vld [vmem:[%s1875_s2 + $0x70] sm:$0xff]  ;;  %v708_v53 = vld [vmem:[%s1875_s2 + $0x58] sm:$0xff] }
 0x15d   :  { %v724_v54 = vld [vmem:[%s1875_s2 + $0xd8] sm:$0xff]  ;;  %v51_v56 = vld [vmem:[%s1875_s2 + $0xf0] sm:$0xff]  ;;  %v740_v58 = vsub.f32 %v609_v18, %v708_v53  ;;  %v612_v2 = vadd.f32 %v1196_v60, %v35_v50 }
 0x15e   :  { %v756_v59 = vsub.f32 %v625_v19, %v724_v54  ;;  %643 = vst [vmem:[%s1876_s4 + $0x68] sm:$0xff] %v611_v48  ;;  %659 = vst [vmem:[%s1876_s4 + $0xe8] sm:$0xff] %v627_v49  ;;  %v628_v3 = vadd.f32 %v1244_v61, %v51_v56 }
 0x15f   :  { %v1069_v0 = vpack.c.bf16 %v740_v58, %v739_v51 }
 0x160   :  { %v1109_v1 = vpack.c.bf16 %v756_v59, %v755_v52 }
 0x161   :  { %1125 = vst [vmem:[%s1877_s3 + $0x28] sm:$0xff] %v1069_v0  }
 0x162   :  { %1133 = vst [vmem:[%s1877_s3 + $0x68] sm:$0xff] %v1109_v1  }
 0x165   :  { %v36_v4 = vld [vmem:[%s1875_s2 + $0x78] sm:$0xff] }
 0x166   :  { %v52_v6 = vld [vmem:[%s1875_s2 + $0xf8] sm:$0xff]  ;;  %v613_v12 = vadd.f32 %v1199_v8, %v36_v4 }
 0x167   :  { %644 = vst [vmem:[%s1876_s4 + $0x70] sm:$0xff] %v612_v2  ;;  %660 = vst [vmem:[%s1876_s4 + $0xf0] sm:$0xff] %v628_v3  ;;  %v629_v13 = vadd.f32 %v1247_v9, %v52_v6 }
 0x16e   :  { %v709_v10 = vld [vmem:[%s1875_s2 + $0x60] sm:$0xff]  ;;  %v710_v14 = vld [vmem:[%s1875_s2 + $0x68] sm:$0xff] }
 0x16f   :  { %v725_v11 = vld [vmem:[%s1875_s2 + $0xe0] sm:$0xff]  ;;  %v726_v15 = vld [vmem:[%s1875_s2 + $0xe8] sm:$0xff]  ;;  %v741_v16 = vsub.f32 %v610_v36, %v709_v10  ;;  %v742_v18 = vsub.f32 %v611_v48, %v710_v14 }
 0x170   :  { %v757_v17 = vsub.f32 %v626_v37, %v725_v11  ;;  %v758_v19 = vsub.f32 %v627_v49, %v726_v15  ;;  %645 = vst [vmem:[%s1876_s4 + $0x78] sm:$0xff] %v613_v12  ;;  %661 = vst [vmem:[%s1876_s4 + $0xf8] sm:$0xff] %v629_v13 }
 0x171   :  { %v1074_v20 = vpack.c.bf16 %v742_v18, %v741_v16 }
 0x172   :  { %v1114_v21 = vpack.c.bf16 %v758_v19, %v757_v17 }
 0x173   :  { %1126 = vst [vmem:[%s1877_s3 + $0x30] sm:$0xff] %v1074_v20  }
 0x174   :  { %1134 = vst [vmem:[%s1877_s3 + $0x70] sm:$0xff] %v1114_v21  }
 0x177   :  { %v711_v22 = vld [vmem:[%s1875_s2 + $0x70] sm:$0xff]  ;;  %v712_v24 = vld [vmem:[%s1875_s2 + $0x78] sm:$0xff] }
 0x178   :  { %v727_v23 = vld [vmem:[%s1875_s2 + $0xf0] sm:$0xff]  ;;  %v728_v25 = vld [vmem:[%s1875_s2 + $0xf8] sm:$0xff]  ;;  %v743_v26 = vsub.f32 %v612_v2, %v711_v22  ;;  %v744_v28 = vsub.f32 %v613_v12, %v712_v24 }
 0x179   :  { %v759_v27 = vsub.f32 %v628_v3, %v727_v23  ;;  %v760_v29 = vsub.f32 %v629_v13, %v728_v25 }
 0x17a   :  { %v1079_v30 = vpack.c.bf16 %v744_v28, %v743_v26 }
 0x17b   :  { %v1119_v31 = vpack.c.bf16 %v760_v29, %v759_v27 }
 0x17c   :  { %1127 = vst [vmem:[%s1877_s3 + $0x38] sm:$0xff] %v1079_v30  }
 0x17d   :  { %1135 = vst [vmem:[%s1877_s3 + $0x78] sm:$0xff] %v1119_v31  }

// kernel: lightgcn_forward_pallas.5
= control target key start
LH: loop header
LB: loop body
LE: loop exit
PB: predicated region body
PF: predicated region fallthrough
CT: control target
= control target key end

     0   :  { %s1869_s0 = inlined_call_operand.vmem [shape: bf16[256,256], index: 0, kind: input, shape index: {}]   ;;  %s1870_s1 = inlined_call_operand.vmem [shape: bf16[256,128], index: 1, kind: input, shape index: {}]   ;;  %s1871_s2 = inlined_call_operand.vmem [shape: f32[256,128], index: 2, kind: input, shape index: {}, may-alias: {2,4}]   ;;  %s1872_s3 = inlined_call_operand.hbm [shape: bf16[256,128], index: 3, kind: output, shape index: {0}]   ;;  %s1873_s4 = inlined_call_operand.vmem [shape: f32[256,128], index: 4, kind: output, shape index: {1}, may-alias: {2,4}]  }
   0x1   :  { %v1280_v0 = vld [vmem:[%s1870_s1 + $0x78] sm:$0xff]   ;;  %v1282_v2 = vld [vmem:[%s1870_s1 + $0x70] sm:$0xff]   ;;  %v1284_v4 = vld [vmem:[%s1870_s1 + $0x68] sm:$0xff]  }
   0x2   :  { %v1281_v1 = vld [vmem:[%s1870_s1 + $0x38] sm:$0xff]   ;;  %1149 = vmatprep.subr.bf16.mxu0 %v1280_v0  ;;  %1261 = vmatprep.subr.bf16.mxu1 %v1280_v0  ;;  %v1283_v3 = vld [vmem:[%s1870_s1 + $0x30] sm:$0xff]   ;;  %v1285_v5 = vld [vmem:[%s1870_s1 + $0x28] sm:$0xff]  }
   0x3   :  { %1150 = vmatpush3.bf16.msra.mxu0 %v1281_v1  ;;  %1269 = vmatpush3.bf16.msra.mxu1 %v1281_v1  ;;  %v1286_v6 = vld [vmem:[%s1870_s1 + $0x60] sm:$0xff]   ;;  %v1288_v8 = vld [vmem:[%s1870_s1 + $0x58] sm:$0xff]   ;;  %v1290_v10 = vld [vmem:[%s1870_s1 + $0x50] sm:$0xff]  }
   0x4   :  { %1151 = vmatprep.subr.bf16.mxu0 %v1282_v2  ;;  %1262 = vmatprep.subr.bf16.mxu1 %v1282_v2  ;;  %v1287_v7 = vld [vmem:[%s1870_s1 + $0x20] sm:$0xff]   ;;  %v1289_v9 = vld [vmem:[%s1870_s1 + $0x18] sm:$0xff]   ;;  %v1291_v13 = vld [vmem:[%s1870_s1 + $0x10] sm:$0xff]  }
   0x5   :  { %v1298_v11 = vld [vmem:[%s1869_s0 + $0x4] ss:$8 sps:$4 sm:$0xff]   ;;  %v1296_v18 = vld [vmem:[%s1869_s0] ss:$8 sps:$4 sm:$0xff]   ;;  %v1302_v20 = vld [vmem:[%s1869_s0 + $0x14] ss:$8 sps:$4 sm:$0xff]  }
   0x6   :  { %v1301_v12 = vld [vmem:[%s1869_s0 + $0x84] ss:$8 sps:$4 sm:$0xff]   ;;  %470 = vmatprep.mubr.bf16.mxu0 %v1298_v11  ;;  %v1299_v19 = vld [vmem:[%s1869_s0 + $0x80] ss:$8 sps:$4 sm:$0xff]   ;;  %v1304_v21 = vld [vmem:[%s1869_s0 + $0x94] ss:$8 sps:$4 sm:$0xff]  }
   0x7   :  { %1152 = vmatpush3.bf16.msra.mxu0 %v1283_v3  ;;  %1270 = vmatpush3.bf16.msra.mxu1 %v1283_v3  ;;  %v1292_v14 = vld [vmem:[%s1870_s1 + $0x48] sm:$0xff]   ;;  %v1294_v16 = vld [vmem:[%s1870_s1 + $0x40] sm:$0xff]  }
   0x8   :  { %1153 = vmatprep.subr.bf16.mxu0 %v1284_v4  ;;  %1263 = vmatprep.subr.bf16.mxu1 %v1284_v4  ;;  %v1293_v15 = vld [vmem:[%s1870_s1 + $0x8] sm:$0xff]   ;;  %v1295_v17 = vld [vmem:[%s1870_s1] sm:$0xff]  }
   0x9   :  { %534 = vmatprep.mubr.bf16.mxu1 %v1301_v12 }
   0xb   :  { %1154 = vmatpush3.bf16.msra.mxu0 %v1285_v5  ;;  %1271 = vmatpush3.bf16.msra.mxu1 %v1285_v5 }
   0xc   :  { %1155 = vmatprep.subr.bf16.mxu0 %v1286_v6  ;;  %1264 = vmatprep.subr.bf16.mxu1 %v1286_v6 }
   0xf   :  { %1156 = vmatpush3.bf16.msra.mxu0 %v1287_v7  ;;  %1272 = vmatpush3.bf16.msra.mxu1 %v1287_v7 }
  0x10   :  { %1157 = vmatprep.subr.bf16.mxu0 %v1288_v8  ;;  %1265 = vmatprep.subr.bf16.mxu1 %v1288_v8 }
  0x13   :  { %1158 = vmatpush3.bf16.msra.mxu0 %v1289_v9  ;;  %1273 = vmatpush3.bf16.msra.mxu1 %v1289_v9 }
  0x14   :  { %1159 = vmatprep.subr.bf16.mxu0 %v1290_v10  ;;  %1266 = vmatprep.subr.bf16.mxu1 %v1290_v10 }
  0x17   :  { %1160 = vmatpush3.bf16.msra.mxu0 %v1291_v13  ;;  %1274 = vmatpush3.bf16.msra.mxu1 %v1291_v13 }
  0x18   :  { %1161 = vmatprep.subr.bf16.mxu0 %v1292_v14  ;;  %1267 = vmatprep.subr.bf16.mxu1 %v1292_v14 }
  0x1b   :  { %1162 = vmatpush3.bf16.msra.mxu0 %v1293_v15  ;;  %1275 = vmatpush3.bf16.msra.mxu1 %v1293_v15 }
  0x1c   :  { %1163 = vmatprep.subr.bf16.mxu0 %v1294_v16  ;;  %1268 = vmatprep.subr.bf16.mxu1 %v1294_v16 }
  0x1f   :  { %1164 = vmatpush3.bf16.msra.mxu0 %v1295_v17  ;;  %1276 = vmatpush3.bf16.msra.mxu1 %v1295_v17 }
  0x22   :  { %471 = vmatmul.mubr.bf16.vlgmr.msra.gmra.mxu0 %v1296_v18  ;;  %535 = vmatmul.mubr.bf16.vlgmr.msra.gmra.mxu1 %v1299_v19 }
  0x23   :  { %478 = vmatprep.mubr.bf16.mxu0 %v1302_v20  ;;  %542 = vmatprep.mubr.bf16.mxu1 %v1304_v21 }
  0x24   :  { %10 = vsyncpa [#allocation3], 0  ;;  %v1306_v22 = vld [vmem:[%s1869_s0 + $0x10] ss:$8 sps:$4 sm:$0xff]   ;;  %v1308_v24 = vld [vmem:[%s1869_s0 + $0x24] ss:$8 sps:$4 sm:$0xff]  }
  0x25   :  { %v1307_v23 = vld [vmem:[%s1869_s0 + $0x90] ss:$8 sps:$4 sm:$0xff]   ;;  %v1310_v25 = vld [vmem:[%s1869_s0 + $0xa4] ss:$8 sps:$4 sm:$0xff]   ;;  %v1312_v26 = vld [vmem:[%s1869_s0 + $0x20] ss:$8 sps:$4 sm:$0xff]  }
  0x26   :  { %v1313_v27 = vld [vmem:[%s1869_s0 + $0xa0] ss:$8 sps:$4 sm:$0xff]   ;;  %v1314_v28 = vld [vmem:[%s1869_s0 + $0x34] ss:$8 sps:$4 sm:$0xff]   ;;  %v1318_v30 = vld [vmem:[%s1869_s0 + $0x30] ss:$8 sps:$4 sm:$0xff]  }
  0x27   :  { %v1316_v29 = vld [vmem:[%s1869_s0 + $0xb4] ss:$8 sps:$4 sm:$0xff]   ;;  %v1319_v31 = vld [vmem:[%s1869_s0 + $0xb0] ss:$8 sps:$4 sm:$0xff]   ;;  %v1320_v32 = vld [vmem:[%s1869_s0 + $0x44] ss:$8 sps:$4 sm:$0xff]  }
  0x28   :  { %v1322_v33 = vld [vmem:[%s1869_s0 + $0xc4] ss:$8 sps:$4 sm:$0xff]   ;;  %v1324_v34 = vld [vmem:[%s1869_s0 + $0x40] ss:$8 sps:$4 sm:$0xff]   ;;  %v1326_v36 = vld [vmem:[%s1869_s0 + $0x54] ss:$8 sps:$4 sm:$0xff]  }
  0x29   :  { %v1325_v35 = vld [vmem:[%s1869_s0 + $0xc0] ss:$8 sps:$4 sm:$0xff]   ;;  %v1328_v37 = vld [vmem:[%s1869_s0 + $0xd4] ss:$8 sps:$4 sm:$0xff]   ;;  %v1330_v38 = vld [vmem:[%s1869_s0 + $0x50] ss:$8 sps:$4 sm:$0xff]  }
  0x2a   :  { %479 = vmatmul.mubr.bf16.gmra.mxu0 %v1306_v22  ;;  %543 = vmatmul.mubr.bf16.gmra.mxu1 %v1307_v23  ;;  %v1331_v39 = vld [vmem:[%s1869_s0 + $0xd0] ss:$8 sps:$4 sm:$0xff]   ;;  %v1332_v40 = vld [vmem:[%s1869_s0 + $0x64] ss:$8 sps:$4 sm:$0xff]   ;;  %v1336_v42 = vld [vmem:[%s1869_s0 + $0x60] ss:$8 sps:$4 sm:$0xff]  }
  0x2b   :  { %486 = vmatprep.mubr.bf16.mxu0 %v1308_v24  ;;  %550 = vmatprep.mubr.bf16.mxu1 %v1310_v25  ;;  %v1334_v41 = vld [vmem:[%s1869_s0 + $0xe4] ss:$8 sps:$4 sm:$0xff]   ;;  %v1337_v43 = vld [vmem:[%s1869_s0 + $0xe0] ss:$8 sps:$4 sm:$0xff]   ;;  %v1338_v44 = vld [vmem:[%s1869_s0 + $0x74] ss:$8 sps:$4 sm:$0xff]  }
  0x2c   :  { %v1340_v45 = vld [vmem:[%s1869_s0 + $0xf4] ss:$8 sps:$4 sm:$0xff]   ;;  %v1342_v46 = vld [vmem:[%s1869_s0 + $0x70] ss:$8 sps:$4 sm:$0xff]   ;;  %v22_v50 = vld [vmem:[%s1871_s2] sm:$0xff]  ;;  %s1366_s23 = smov [#allocation2]  }
  0x2d   :  { %v1343_v47 = vld [vmem:[%s1869_s0 + $0xf0] ss:$8 sps:$4 sm:$0xff]   ;;  %v38_v52 = vld [vmem:[%s1871_s2 + $0x80] sm:$0xff]  ;;  %v23_v60 = vld [vmem:[%s1871_s2 + $0x8] sm:$0xff]  ;;  %s927_s24 = sshll.u32 %s1366_s23, 4  ;;  %s928_s24 = int_to_ptr.vmem [resolvable:$true] %s927_s24 }
  0x2e   :  { %v39_v62 = vld [vmem:[%s1871_s2 + $0x88] sm:$0xff]  ;;  %s1344_s28 = scalar_lea.vmem %s928_s24, 2048  ;;  %p1349_p1 = scmp.lt.s32.totalorder %s928_s24, %s928_s24 }
  0x2f   :  { %p1345_p0 = scmp.ne.s32.totalorder %s928_s24, %s1344_s28  ;;  %p1350_p2 = scmp.lt.s32.totalorder %s1344_s28, %s1344_s28 }
  0x31   :  { %p1351_p3 = por %p1350_p2, %p1349_p1 }
  0x32   :  { %487 = vmatmul.mubr.bf16.gmra.mxu0 %v1312_v26  ;;  %551 = vmatmul.mubr.bf16.gmra.mxu1 %v1313_v27 }
  0x33   :  { %494 = vmatprep.mubr.bf16.mxu0 %v1314_v28  ;;  %558 = vmatprep.mubr.bf16.mxu1 %v1316_v29  ;;  %p1352_p4 = pnand %p1351_p3, %p1345_p0 }
  0x3a   :  { %495 = vmatmul.mubr.bf16.gmra.mxu0 %v1318_v30  ;;  %559 = vmatmul.mubr.bf16.gmra.mxu1 %v1319_v31 }
  0x3b   :  { %502 = vmatprep.mubr.bf16.mxu0 %v1320_v32  ;;  %566 = vmatprep.mubr.bf16.mxu1 %v1322_v33 }
  0x42   :  { %503 = vmatmul.mubr.bf16.gmra.mxu0 %v1324_v34  ;;  %567 = vmatmul.mubr.bf16.gmra.mxu1 %v1325_v35 }
  0x43   :  { %510 = vmatprep.mubr.bf16.mxu0 %v1326_v36  ;;  %574 = vmatprep.mubr.bf16.mxu1 %v1328_v37 }
  0x4a   :  { %511 = vmatmul.mubr.bf16.gmra.mxu0 %v1330_v38  ;;  %575 = vmatmul.mubr.bf16.gmra.mxu1 %v1331_v39 }
  0x4b   :  { %518 = vmatprep.mubr.bf16.mxu0 %v1332_v40  ;;  %582 = vmatprep.mubr.bf16.mxu1 %v1334_v41 }
  0x52   :  { %519 = vmatmul.mubr.bf16.gmra.mxu0 %v1336_v42  ;;  %583 = vmatmul.mubr.bf16.gmra.mxu1 %v1337_v43 }
  0x53   :  { %526 = vmatprep.mubr.bf16.mxu0 %v1338_v44  ;;  %590 = vmatprep.mubr.bf16.mxu1 %v1340_v45 }
  0x5a   :  { %527 = vmatmul.mubr.bf16.gmra.mxu0 %v1342_v46  ;;  %591 = vmatmul.mubr.bf16.gmra.mxu1 %v1343_v47 }
  0xe2   :  { %v1165_v48 = vpop.f32.mrf.mxu0  ;;  %v1213_v49 = vpop.f32.mrf.mxu1 }
  0xe4   :  { %v1166_v51 = vpop.f32.mrf.mxu0  ;;  %v1214_v53 = vpop.f32.mrf.mxu1 }
  0xe5   :  { %v1167_v54 = vadd.f32 %v1166_v51, %v1165_v48  ;;  %v1215_v55 = vadd.f32 %v1214_v53, %v1213_v49 }
  0xe6   :  { %v1168_v56 = vpop.f32.mrf.mxu0  ;;  %v1216_v57 = vpop.f32.mrf.mxu1 }
  0xe7   :  { %v599_v58 = vadd.f32 %v1167_v54, %v22_v50  ;;  %v615_v59 = vadd.f32 %v1215_v55, %v38_v52 }
  0xe8   :  { %v1169_v61 = vpop.f32.mrf.mxu0  ;;  %v1217_v63 = vpop.f32.mrf.mxu1 }
  0xe9   :  { %631 = vst [vmem:[%s1873_s4] sm:$0xff] %v599_v58  ;;  %647 = vst [vmem:[%s1873_s4 + $0x80] sm:$0xff] %v615_v59  ;;  %v1170_v0 = vadd.f32 %v1169_v61, %v1168_v56  ;;  %v1218_v1 = vadd.f32 %v1217_v63, %v1216_v57 }
  0xea   :  { %v1171_v2 = vpop.f32.mrf.mxu0  ;;  %v1219_v3 = vpop.f32.mrf.mxu1 }
  0xeb   :  { %v600_v4 = vadd.f32 %v1170_v0, %v23_v60  ;;  %v616_v5 = vadd.f32 %v1218_v1, %v39_v62 }
  0xec   :  { %v1172_v7 = vpop.f32.mrf.mxu0  ;;  %v1220_v9 = vpop.f32.mrf.mxu1 }
  0xed   :  { %v1173_v10 = vadd.f32 %v1172_v7, %v1171_v2  ;;  %v1221_v11 = vadd.f32 %v1220_v9, %v1219_v3 }
  0xee   :  { %v1174_v12 = vpop.f32.mrf.mxu0  ;;  %v1222_v13 = vpop.f32.mrf.mxu1 }
  0xf0   :  { %v24_v6 = vld [vmem:[%s1871_s2 + $0x10] sm:$0xff]  ;;  %v1175_v17 = vpop.f32.mrf.mxu0  ;;  %v1223_v19 = vpop.f32.mrf.mxu1 }
  0xf1   :  { %v40_v8 = vld [vmem:[%s1871_s2 + $0x90] sm:$0xff]  ;;  %v1568_v14 = vadd.f32 %v1173_v10, %v24_v6  ;;  %v1176_v22 = vadd.f32 %v1175_v17, %v1174_v12  ;;  %v1224_v23 = vadd.f32 %v1223_v19, %v1222_v13 }
  0xf2   :  { %632 = vst [vmem:[%s1873_s4 + $0x8] sm:$0xff] %v600_v4  ;;  %648 = vst [vmem:[%s1873_s4 + $0x88] sm:$0xff] %v616_v5  ;;  %v1570_v15 = vadd.f32 %v1221_v11, %v40_v8  ;;  %v1177_v24 = vpop.f32.mrf.mxu0  ;;  %v1225_v25 = vpop.f32.mrf.mxu1 }
  0xf4   :  { %v1178_v33 = vpop.f32.mrf.mxu0  ;;  %v1226_v35 = vpop.f32.mrf.mxu1 }
  0xf5   :  { %v1179_v38 = vadd.f32 %v1178_v33, %v1177_v24  ;;  %v1227_v39 = vadd.f32 %v1226_v35, %v1225_v25 }
  0xf6   :  { %v1180_v40 = vpop.f32.mrf.mxu0  ;;  %v1228_v41 = vpop.f32.mrf.mxu1 }
  0xf8   :  { %v1181_v47 = vpop.f32.mrf.mxu0  ;;  %v1229_v49 = vpop.f32.mrf.mxu1 }
  0xf9   :  { %v25_v16 = vld [vmem:[%s1871_s2 + $0x18] sm:$0xff]  ;;  %v698_v20 = vld [vmem:[%s1871_s2] sm:$0xff]  ;;  %v1182_v52 = vadd.f32 %v1181_v47, %v1180_v40  ;;  %v1230_v53 = vadd.f32 %v1229_v49, %v1228_v41 }
  0xfa   :  { %v41_v18 = vld [vmem:[%s1871_s2 + $0x98] sm:$0xff]  ;;  %v714_v21 = vld [vmem:[%s1871_s2 + $0x80] sm:$0xff]  ;;  %v602_v26 = vadd.f32 %v1176_v22, %v25_v16  ;;  %v730_v29 = vsub.f32 %v599_v58, %v698_v20  ;;  %v1183_v54 = vpop.f32.mrf.mxu0  ;;  %v1231_v55 = vpop.f32.mrf.mxu1 }
  0xfb   :  { %633 = vst [vmem:[%s1873_s4 + $0x10] sm:$0xff] %v1568_v14  ;;  %649 = vst [vmem:[%s1873_s4 + $0x90] sm:$0xff] %v1570_v15  ;;  %v618_v27 = vadd.f32 %v1224_v23, %v41_v18  ;;  %v746_v30 = vsub.f32 %v615_v59, %v714_v21 }
  0xfc   :  { %v1184_v63 = vpop.f32.mrf.mxu0  ;;  %v1232_v1 = vpop.f32.mrf.mxu1 }
  0xfe   :  { %v1186_v6 = vpop.f32.mrf.mxu0  ;;  %v1234_v7 = vpop.f32.mrf.mxu1 }
 0x100   :  { %v1187_v13 = vpop.f32.mrf.mxu0 }
 0x101   :  { %v1188_v18 = vadd.f32 %v1187_v13, %v1186_v6 }
 0x102   :  { %v26_v28 = vld [vmem:[%s1871_s2 + $0x20] sm:$0xff]  ;;  %v699_v31 = vld [vmem:[%s1871_s2 + $0x8] sm:$0xff]  ;;  %v1189_v20 = vpop.f32.mrf.mxu0 }
 0x103   :  { %v715_v32 = vld [vmem:[%s1871_s2 + $0x88] sm:$0xff]  ;;  %v42_v34 = vld [vmem:[%s1871_s2 + $0xa0] sm:$0xff]  ;;  %v731_v36 = vsub.f32 %v600_v4, %v699_v31  ;;  %v1610_v44 = vadd.f32 %v1179_v38, %v26_v28  ;;  %v1185_v4 = vadd.f32 %v1184_v63, %v1183_v54 }
 0x104   :  { %v747_v37 = vsub.f32 %v616_v5, %v715_v32  ;;  %634 = vst [vmem:[%s1873_s4 + $0x18] sm:$0xff] %v602_v26  ;;  %650 = vst [vmem:[%s1873_s4 + $0x98] sm:$0xff] %v618_v27  ;;  %v1612_v45 = vadd.f32 %v1227_v39, %v42_v34  ;;  %v1233_v5 = vadd.f32 %v1232_v1, %v1231_v55 }
 0x105   :  { %v1057_v42 = vpack.c.bf16 %v731_v36, %v730_v29  ;;  %v1190_v29 = vpop.f32.mrf.mxu0 }
 0x106   :  { %v1097_v43 = vpack.c.bf16 %v747_v37, %v746_v30  ;;  %v1191_v34 = vadd.f32 %v1190_v29, %v1189_v20 }
 0x107   :  { %1058 = vst [vmem:[#allocation2] sm:$0xff] %v1057_v42   ;;  %v1192_v36 = vpop.f32.mrf.mxu0 }
 0x108   :  { %1141 = vst [vmem:[#allocation2 + $0x40] sm:$0xff] %v1097_v43  }
 0x109   :  { %v1193_v43 = vpop.f32.mrf.mxu0 }
 0x10b   :  { %v27_v46 = vld [vmem:[%s1871_s2 + $0x28] sm:$0xff]  ;;  %v700_v50 = vld [vmem:[%s1871_s2 + $0x10] sm:$0xff] }
 0x10c   :  { %v43_v48 = vld [vmem:[%s1871_s2 + $0xa8] sm:$0xff]  ;;  %v716_v51 = vld [vmem:[%s1871_s2 + $0x90] sm:$0xff]  ;;  %v604_v56 = vadd.f32 %v1182_v52, %v27_v46  ;;  %v732_v59 = vsub.f32 %v1568_v14, %v700_v50  ;;  %v1195_v50 = vpop.f32.mrf.mxu0 }
 0x10d   :  { %635 = vst [vmem:[%s1873_s4 + $0x20] sm:$0xff] %v1610_v44  ;;  %651 = vst [vmem:[%s1873_s4 + $0xa0] sm:$0xff] %v1612_v45  ;;  %v620_v57 = vadd.f32 %v1230_v53, %v43_v48  ;;  %v748_v60 = vsub.f32 %v1570_v15, %v716_v51  ;;  %v1235_v15 = vpop.f32.mrf.mxu1  ;;  %v1194_v48 = vadd.f32 %v1193_v43, %v1192_v36 }
 0x10e   :  { %v1236_v19 = vadd.f32 %v1235_v15, %v1234_v7 }
 0x10f   :  { %v1237_v21 = vpop.f32.mrf.mxu1 }
 0x111   :  { %v1238_v31 = vpop.f32.mrf.mxu1 }
 0x112   :  { %v1239_v35 = vadd.f32 %v1238_v31, %v1237_v21 }
 0x113   :  { %v1240_v37 = vpop.f32.mrf.mxu1 }
 0x114   :  { %v28_v58 = vld [vmem:[%s1871_s2 + $0x30] sm:$0xff]  ;;  %v701_v61 = vld [vmem:[%s1871_s2 + $0x18] sm:$0xff] }
 0x115   :  { %v717_v62 = vld [vmem:[%s1871_s2 + $0x98] sm:$0xff]  ;;  %v44_v0 = vld [vmem:[%s1871_s2 + $0xb0] sm:$0xff]  ;;  %v733_v2 = vsub.f32 %v602_v26, %v701_v61  ;;  %v1654_v10 = vadd.f32 %v1185_v4, %v28_v58 }
 0x116   :  { %v749_v3 = vsub.f32 %v618_v27, %v717_v62  ;;  %636 = vst [vmem:[%s1873_s4 + $0x28] sm:$0xff] %v604_v56  ;;  %652 = vst [vmem:[%s1873_s4 + $0xa8] sm:$0xff] %v620_v57  ;;  %v1656_v11 = vadd.f32 %v1233_v5, %v44_v0 }
 0x117   :  { %v1062_v8 = vpack.c.bf16 %v733_v2, %v732_v59  ;;  %v1196_v59 = vpop.f32.mrf.mxu0 }
 0x118   :  { %v1102_v9 = vpack.c.bf16 %v749_v3, %v748_v60  ;;  %v1197_v0 = vadd.f32 %v1196_v59, %v1195_v50 }
 0x119   :  { %1134 = vst [vmem:[#allocation2 + $0x8] sm:$0xff] %v1062_v8   ;;  %v1198_v2 = vpop.f32.mrf.mxu0 }
 0x11a   :  { %1142 = vst [vmem:[#allocation2 + $0x48] sm:$0xff] %v1102_v9  }
 0x11b   :  { %v1199_v9 = vpop.f32.mrf.mxu0 }
 0x11d   :  { %v29_v12 = vld [vmem:[%s1871_s2 + $0x38] sm:$0xff]  ;;  %v702_v16 = vld [vmem:[%s1871_s2 + $0x20] sm:$0xff] }
 0x11e   :  { %v45_v14 = vld [vmem:[%s1871_s2 + $0xb8] sm:$0xff]  ;;  %v718_v17 = vld [vmem:[%s1871_s2 + $0xa0] sm:$0xff]  ;;  %v606_v22 = vadd.f32 %v1188_v18, %v29_v12  ;;  %v734_v25 = vsub.f32 %v1610_v44, %v702_v16  ;;  %v1201_v16 = vpop.f32.mrf.mxu0 }
 0x11f   :  { %637 = vst [vmem:[%s1873_s4 + $0x30] sm:$0xff] %v1654_v10  ;;  %653 = vst [vmem:[%s1873_s4 + $0xb0] sm:$0xff] %v1656_v11  ;;  %v622_v23 = vadd.f32 %v1236_v19, %v45_v14  ;;  %v750_v26 = vsub.f32 %v1612_v45, %v718_v17  ;;  %v1241_v45 = vpop.f32.mrf.mxu1  ;;  %v1200_v14 = vadd.f32 %v1199_v9, %v1198_v2 }
 0x120   :  { %v1242_v49 = vadd.f32 %v1241_v45, %v1240_v37 }
 0x121   :  { %v1243_v51 = vpop.f32.mrf.mxu1 }
 0x123   :  { %v1244_v61 = vpop.f32.mrf.mxu1 }
 0x124   :  { %v1245_v1 = vadd.f32 %v1244_v61, %v1243_v51 }
 0x125   :  { %v1246_v3 = vpop.f32.mrf.mxu1 }
 0x126   :  { %v30_v24 = vld [vmem:[%s1871_s2 + $0x40] sm:$0xff]  ;;  %v703_v27 = vld [vmem:[%s1871_s2 + $0x28] sm:$0xff] }
 0x127   :  { %v719_v28 = vld [vmem:[%s1871_s2 + $0xa8] sm:$0xff]  ;;  %v46_v30 = vld [vmem:[%s1871_s2 + $0xc0] sm:$0xff]  ;;  %v735_v32 = vsub.f32 %v604_v56, %v703_v27  ;;  %v1698_v40 = vadd.f32 %v1191_v34, %v30_v24 }
 0x128   :  { %v751_v33 = vsub.f32 %v620_v57, %v719_v28  ;;  %638 = vst [vmem:[%s1873_s4 + $0x38] sm:$0xff] %v606_v22  ;;  %654 = vst [vmem:[%s1873_s4 + $0xb8] sm:$0xff] %v622_v23  ;;  %v1700_v41 = vadd.f32 %v1239_v35, %v46_v30 }
 0x129   :  { %v1067_v38 = vpack.c.bf16 %v735_v32, %v734_v25  ;;  %v1202_v25 = vpop.f32.mrf.mxu0 }
 0x12a   :  { %v1107_v39 = vpack.c.bf16 %v751_v33, %v750_v26  ;;  %v1203_v30 = vadd.f32 %v1202_v25, %v1201_v16 }
 0x12b   :  { %1135 = vst [vmem:[#allocation2 + $0x10] sm:$0xff] %v1067_v38   ;;  %v1204_v32 = vpop.f32.mrf.mxu0 }
 0x12c   :  { %1143 = vst [vmem:[#allocation2 + $0x50] sm:$0xff] %v1107_v39  }
 0x12d   :  { %v1205_v39 = vpop.f32.mrf.mxu0 }
 0x12f   :  { %v31_v42 = vld [vmem:[%s1871_s2 + $0x48] sm:$0xff]  ;;  %v704_v46 = vld [vmem:[%s1871_s2 + $0x30] sm:$0xff] }
 0x130   :  { %v47_v44 = vld [vmem:[%s1871_s2 + $0xc8] sm:$0xff]  ;;  %v720_v47 = vld [vmem:[%s1871_s2 + $0xb0] sm:$0xff]  ;;  %v608_v52 = vadd.f32 %v1194_v48, %v31_v42  ;;  %v736_v55 = vsub.f32 %v1654_v10, %v704_v46  ;;  %v1207_v46 = vpop.f32.mrf.mxu0 }
 0x131   :  { %639 = vst [vmem:[%s1873_s4 + $0x40] sm:$0xff] %v1698_v40  ;;  %655 = vst [vmem:[%s1873_s4 + $0xc0] sm:$0xff] %v1700_v41  ;;  %v624_v53 = vadd.f32 %v1242_v49, %v47_v44  ;;  %v752_v56 = vsub.f32 %v1656_v11, %v720_v47  ;;  %v1247_v11 = vpop.f32.mrf.mxu1  ;;  %v1206_v44 = vadd.f32 %v1205_v39, %v1204_v32 }
 0x132   :  { %v1248_v15 = vadd.f32 %v1247_v11, %v1246_v3 }
 0x133   :  { %v1249_v17 = vpop.f32.mrf.mxu1 }
 0x135   :  { %v1250_v27 = vpop.f32.mrf.mxu1 }
 0x136   :  { %v1251_v31 = vadd.f32 %v1250_v27, %v1249_v17 }
 0x137   :  { %v1252_v33 = vpop.f32.mrf.mxu1 }
 0x138   :  { %v32_v54 = vld [vmem:[%s1871_s2 + $0x50] sm:$0xff]  ;;  %v705_v57 = vld [vmem:[%s1871_s2 + $0x38] sm:$0xff] }
 0x139   :  { %v721_v58 = vld [vmem:[%s1871_s2 + $0xb8] sm:$0xff]  ;;  %v48_v60 = vld [vmem:[%s1871_s2 + $0xd0] sm:$0xff]  ;;  %v737_v62 = vsub.f32 %v606_v22, %v705_v57  ;;  %v1742_v6 = vadd.f32 %v1197_v0, %v32_v54 }
 0x13a   :  { %v753_v63 = vsub.f32 %v622_v23, %v721_v58  ;;  %640 = vst [vmem:[%s1873_s4 + $0x48] sm:$0xff] %v608_v52  ;;  %656 = vst [vmem:[%s1873_s4 + $0xc8] sm:$0xff] %v624_v53  ;;  %v1744_v7 = vadd.f32 %v1245_v1, %v48_v60 }
 0x13b   :  { %v1072_v4 = vpack.c.bf16 %v737_v62, %v736_v55  ;;  %v1208_v55 = vpop.f32.mrf.mxu0 }
 0x13c   :  { %v1112_v5 = vpack.c.bf16 %v753_v63, %v752_v56  ;;  %v1209_v60 = vadd.f32 %v1208_v55, %v1207_v46 }
 0x13d   :  { %1136 = vst [vmem:[#allocation2 + $0x18] sm:$0xff] %v1072_v4   ;;  %v1210_v62 = vpop.f32.mrf.mxu0 }
 0x13e   :  { %1144 = vst [vmem:[#allocation2 + $0x58] sm:$0xff] %v1112_v5  }
 0x13f   :  { %v1211_v5 = vpop.f32.mrf.mxu0 }
 0x141   :  { %v33_v8 = vld [vmem:[%s1871_s2 + $0x58] sm:$0xff]  ;;  %v706_v12 = vld [vmem:[%s1871_s2 + $0x40] sm:$0xff] }
 0x142   :  { %v49_v10 = vld [vmem:[%s1871_s2 + $0xd8] sm:$0xff]  ;;  %v722_v13 = vld [vmem:[%s1871_s2 + $0xc0] sm:$0xff]  ;;  %v610_v18 = vadd.f32 %v1200_v14, %v33_v8  ;;  %v738_v21 = vsub.f32 %v1698_v40, %v706_v12  ;;  %v1212_v8 = vadd.f32 %v1211_v5, %v1210_v62 }
 0x143   :  { %641 = vst [vmem:[%s1873_s4 + $0x50] sm:$0xff] %v1742_v6  ;;  %657 = vst [vmem:[%s1873_s4 + $0xd0] sm:$0xff] %v1744_v7  ;;  %v626_v19 = vadd.f32 %v1248_v15, %v49_v10  ;;  %v754_v22 = vsub.f32 %v1700_v41, %v722_v13  ;;  %v1253_v41 = vpop.f32.mrf.mxu1 }
 0x144   :  { %v1254_v45 = vadd.f32 %v1253_v41, %v1252_v33 }
 0x145   :  { %v1255_v47 = vpop.f32.mrf.mxu1 }
 0x147   :  { %v1256_v57 = vpop.f32.mrf.mxu1 }
 0x148   :  { %v1257_v61 = vadd.f32 %v1256_v57, %v1255_v47 }
 0x149   :  { %v1258_v63 = vpop.f32.mrf.mxu1 }
 0x14a   :  { %v34_v20 = vld [vmem:[%s1871_s2 + $0x60] sm:$0xff]  ;;  %v707_v23 = vld [vmem:[%s1871_s2 + $0x48] sm:$0xff] }
 0x14b   :  { %v723_v24 = vld [vmem:[%s1871_s2 + $0xc8] sm:$0xff]  ;;  %v50_v26 = vld [vmem:[%s1871_s2 + $0xe0] sm:$0xff]  ;;  %v739_v28 = vsub.f32 %v608_v52, %v707_v23  ;;  %v611_v36 = vadd.f32 %v1203_v30, %v34_v20 }
 0x14c   :  { %v755_v29 = vsub.f32 %v624_v53, %v723_v24  ;;  %642 = vst [vmem:[%s1873_s4 + $0x58] sm:$0xff] %v610_v18  ;;  %658 = vst [vmem:[%s1873_s4 + $0xd8] sm:$0xff] %v626_v19  ;;  %v627_v37 = vadd.f32 %v1251_v31, %v50_v26 }
 0x14d   :  { %v1077_v34 = vpack.c.bf16 %v739_v28, %v738_v21 }
 0x14e   :  { %v1117_v35 = vpack.c.bf16 %v755_v29, %v754_v22 }
 0x14f   :  { %1137 = vst [vmem:[#allocation2 + $0x20] sm:$0xff] %v1077_v34  }
 0x150   :  { %1145 = vst [vmem:[#allocation2 + $0x60] sm:$0xff] %v1117_v35  }
 0x153   :  { %v35_v38 = vld [vmem:[%s1871_s2 + $0x68] sm:$0xff]  ;;  %v708_v42 = vld [vmem:[%s1871_s2 + $0x50] sm:$0xff] }
 0x154   :  { %v51_v40 = vld [vmem:[%s1871_s2 + $0xe8] sm:$0xff]  ;;  %v724_v43 = vld [vmem:[%s1871_s2 + $0xd0] sm:$0xff]  ;;  %v612_v48 = vadd.f32 %v1206_v44, %v35_v38  ;;  %v740_v51 = vsub.f32 %v1742_v6, %v708_v42 }
 0x155   :  { %643 = vst [vmem:[%s1873_s4 + $0x60] sm:$0xff] %v611_v36  ;;  %659 = vst [vmem:[%s1873_s4 + $0xe0] sm:$0xff] %v627_v37  ;;  %v628_v49 = vadd.f32 %v1254_v45, %v51_v40  ;;  %v756_v52 = vsub.f32 %v1744_v7, %v724_v43  ;;  %v1259_v7 = vpop.f32.mrf.mxu1 }
 0x156   :  { %v1260_v9 = vadd.f32 %v1259_v7, %v1258_v63 }
 0x15c   :  { %v36_v50 = vld [vmem:[%s1871_s2 + $0x70] sm:$0xff]  ;;  %v709_v53 = vld [vmem:[%s1871_s2 + $0x58] sm:$0xff] }
 0x15d   :  { %v725_v54 = vld [vmem:[%s1871_s2 + $0xd8] sm:$0xff]  ;;  %v52_v56 = vld [vmem:[%s1871_s2 + $0xf0] sm:$0xff]  ;;  %v741_v58 = vsub.f32 %v610_v18, %v709_v53  ;;  %v613_v2 = vadd.f32 %v1209_v60, %v36_v50 }
 0x15e   :  { %v757_v59 = vsub.f32 %v626_v19, %v725_v54  ;;  %644 = vst [vmem:[%s1873_s4 + $0x68] sm:$0xff] %v612_v48  ;;  %660 = vst [vmem:[%s1873_s4 + $0xe8] sm:$0xff] %v628_v49  ;;  %v629_v3 = vadd.f32 %v1257_v61, %v52_v56 }
 0x15f   :  { %v1082_v0 = vpack.c.bf16 %v741_v58, %v740_v51 }
 0x160   :  { %v1122_v1 = vpack.c.bf16 %v757_v59, %v756_v52 }
 0x161   :  { %1138 = vst [vmem:[#allocation2 + $0x28] sm:$0xff] %v1082_v0  }
 0x162   :  { %1146 = vst [vmem:[#allocation2 + $0x68] sm:$0xff] %v1122_v1  }
 0x165   :  { %v37_v4 = vld [vmem:[%s1871_s2 + $0x78] sm:$0xff] }
 0x166   :  { %v53_v6 = vld [vmem:[%s1871_s2 + $0xf8] sm:$0xff]  ;;  %v614_v12 = vadd.f32 %v1212_v8, %v37_v4 }
 0x167   :  { %645 = vst [vmem:[%s1873_s4 + $0x70] sm:$0xff] %v613_v2  ;;  %661 = vst [vmem:[%s1873_s4 + $0xf0] sm:$0xff] %v629_v3  ;;  %v630_v13 = vadd.f32 %v1260_v9, %v53_v6 }
 0x16e   :  { %v710_v10 = vld [vmem:[%s1871_s2 + $0x60] sm:$0xff]  ;;  %v711_v14 = vld [vmem:[%s1871_s2 + $0x68] sm:$0xff] }
 0x16f   :  { %v726_v11 = vld [vmem:[%s1871_s2 + $0xe0] sm:$0xff]  ;;  %v727_v15 = vld [vmem:[%s1871_s2 + $0xe8] sm:$0xff]  ;;  %v742_v16 = vsub.f32 %v611_v36, %v710_v10  ;;  %v743_v18 = vsub.f32 %v612_v48, %v711_v14 }
 0x170   :  { %v758_v17 = vsub.f32 %v627_v37, %v726_v11  ;;  %v759_v19 = vsub.f32 %v628_v49, %v727_v15  ;;  %646 = vst [vmem:[%s1873_s4 + $0x78] sm:$0xff] %v614_v12  ;;  %662 = vst [vmem:[%s1873_s4 + $0xf8] sm:$0xff] %v630_v13 }
 0x171   :  { %v1087_v20 = vpack.c.bf16 %v743_v18, %v742_v16 }
 0x172   :  { %v1127_v21 = vpack.c.bf16 %v759_v19, %v758_v17 }
 0x173   :  { %1139 = vst [vmem:[#allocation2 + $0x30] sm:$0xff] %v1087_v20  }
 0x174   :  { %1147 = vst [vmem:[#allocation2 + $0x70] sm:$0xff] %v1127_v21  }
 0x177   :  { %v712_v22 = vld [vmem:[%s1871_s2 + $0x70] sm:$0xff]  ;;  %v713_v24 = vld [vmem:[%s1871_s2 + $0x78] sm:$0xff] }
 0x178   :  { %v728_v23 = vld [vmem:[%s1871_s2 + $0xf0] sm:$0xff]  ;;  %v729_v25 = vld [vmem:[%s1871_s2 + $0xf8] sm:$0xff]  ;;  %v744_v26 = vsub.f32 %v613_v2, %v712_v22  ;;  %v745_v28 = vsub.f32 %v614_v12, %v713_v24 }
 0x179   :  { %v760_v27 = vsub.f32 %v629_v3, %v728_v23  ;;  %v761_v29 = vsub.f32 %v630_v13, %v729_v25 }
 0x17a   :  { %v1092_v30 = vpack.c.bf16 %v745_v28, %v744_v26 }
 0x17b   :  { %v1132_v31 = vpack.c.bf16 %v761_v29, %v760_v27 }
 0x17c   :  { %1140 = vst [vmem:[#allocation2 + $0x38] sm:$0xff] %v1092_v30  }
 0x17d   :  { %1148 = vst [vmem:[#allocation2 + $0x78] sm:$0xff] %v1132_v31  }
 0x17e   :  { %1355 = shalt.err (!%p1352_p4)
}
 0x17f   :  { %s1367_s29 = smov 64   ;;  %s1368_s30 = smov 4  }
 0x180   :  { %933 = dma.vmem_to_hbm [thread:$0]  %s928_s24, 2048, %s1872_s3, [#allocation3], %s1367_s29, %s1367_s29, %s1368_s30  }
 0x181   :  { %1364 = dma.done.wait [#allocation3], 2048  }
 0x182   :  { %1365 = vsyncadd [#allocation3], 4294965248 }
 0x183   :  { %941 = vsyncpa [#allocation3], 1 }

</bundles_post_ra>
